<compile_context>
chip_gen: v7x
topology: tpu7x:2x2x1
jax: 0.10.0
libtpu: 0.0.40
codegen_flags: <defaults>
</compile_context>

<pallas_src>
import numpy as np
import jax
import jax.numpy as jnp
from jax import lax
from jax.experimental import pallas as pl
from jax.experimental.pallas import tpu as pltpu

# ---------------------------------------------------------------------------
# configuration (small, consistent with the module: out_ch divisible by
# groups=8 and by SE reduction=16; skip length == stride * input length)
# ---------------------------------------------------------------------------
B = 2
IN_CH = 16
OUT_CH = 32
L_IN = 16
STRIDE = 2                      # upsample factor
KSIZE = 3
PAD = KSIZE // 2
GROUPS = 8
CPG = OUT_CH // GROUPS
REDUCTION = 16
CR = OUT_CH // REDUCTION        # SE bottleneck width
L_OUT = L_IN * STRIDE           # == skip length in the test
GN_EPS = 1e-5
SLOPE = 0.2

# constant-slab row offsets (all multiples of 8)
R_WPRE = 0
R_WPOST = R_WPRE + KSIZE * IN_CH          # 48
R_F1 = R_WPOST + KSIZE * 2 * OUT_CH       # 240
R_F2 = R_F1 + OUT_CH                      # 272
R_GN = R_F2 + OUT_CH                      # 304
CROWS = R_GN + 4                          # 308


# ---------------------------------------------------------------------------
# Pallas kernel: one grid step processes the whole batch
# ---------------------------------------------------------------------------
def _resup_kernel(x_ref, skip_ref, c_ref, o_ref):
    nb, l, cin = x_ref.shape
    n = nb * l
    bf16 = jnp.bfloat16

    # ---- packed constants (static slices are free) -------------------------
    w_pre = c_ref[R_WPRE:R_WPRE + KSIZE * IN_CH, :].astype(bf16)        # (48, 32)
    w_post = c_ref[R_WPOST:R_WPOST + KSIZE * 2 * OUT_CH, :].astype(bf16)  # (192, 32)
    f1 = c_ref[R_F1:R_F1 + OUT_CH, :]                                   # (32, 32)
    f2 = c_ref[R_F2:R_F2 + OUT_CH, :]                                   # (32, 32)
    gnp = c_ref[R_GN:R_GN + 4, :]                                       # (4, 32)
    g1, b1, g2, b2 = gnp[0:1], gnp[1:2], gnp[2:3], gnp[3:4]

    # ---- per-sample conv edge masks on the batch-flattened time axis --------
    pos = lax.broadcasted_iota(jnp.int32, (nb, l, 1), 1).reshape(n, 1)
    is_first = pos == 0
    is_last = pos == (l - 1)

    def taps(v):
        # v: (n, C) f32 -> (in[t-1], in[t+1]) with zero padding at sample edges.
        # pltpu.roll uses the XLU slot; the wrap-around rows are exactly the
        # rows zeroed by the edge masks, so cross-sample contamination is nil.
        prev = pltpu.roll(v, shift=1, axis=0)
        nxt = pltpu.roll(v, shift=n - 1, axis=0)
        prev = jnp.where(is_first, 0.0, prev)
        nxt = jnp.where(is_last, 0.0, nxt)
        return prev, nxt

    def conv3(v, w):
        # v: (n, C) f32, w: (3*C, OUT_CH) bf16 -> (n, OUT_CH) f32.
        # Three per-tap matmuls; bf16 operands, f32 accumulation.
        c = v.shape[1]
        prev, nxt = taps(v)
        acc = jnp.dot(prev.astype(bf16), w[0:c, :],
                      preferred_element_type=jnp.float32)
        acc += jnp.dot(v.astype(bf16), w[c:2 * c, :],
                       preferred_element_type=jnp.float32)
        acc += jnp.dot(nxt.astype(bf16), w[2 * c:3 * c, :],
                       preferred_element_type=jnp.float32)
        return acc

    # group masks for the VPU group reduction (built once, reused by both GNs)
    lane = lax.broadcasted_iota(jnp.int32, (1, OUT_CH), 1)
    gmasks = [((lane >= g * CPG) & (lane < (g + 1) * CPG)).astype(jnp.float32)
              for g in range(GROUPS)]

    def group_reduce(v):
        # v: (rows, OUT_CH) f32 -> per-channel totals of the channel's group,
        # computed entirely on the VPU/XLU in exact f32 (no MXU, no reshapes).
        out = jnp.zeros_like(v)
        for m in gmasks:
            out = out + jnp.sum(v * m, axis=1, keepdims=True) * m
        return out

    inv_cnt = 1.0 / float(l * CPG)

    def group_norm(h, gamma, beta):
        # h: (nb, l, OUT_CH) f32; per-sample, per-group stats over (CPG x l)
        stats = jnp.concatenate([jnp.sum(h, axis=1),
                                 jnp.sum(h * h, axis=1)], axis=0)   # (2*nb, 32)
        red = group_reduce(stats) * inv_cnt
        mean, ex2 = red[:nb], red[nb:]
        var = ex2 - mean * mean
        inv = lax.rsqrt(jnp.maximum(var, 0.0) + GN_EPS)
        return (h - mean[:, None, :]) * (inv[:, None, :] * gamma) + beta

    def leaky(h):
        return jnp.where(h > 0, h, SLOPE * h)

    # ---- conv_pre -> GN -> LeakyReLU ----------------------------------------
    x2 = x_ref[...].reshape(n, cin)                               # (n, Cin) f32
    h = conv3(x2, w_pre)                                          # (n, 32) f32
    h = leaky(group_norm(h.reshape(nb, l, OUT_CH), g1, b1))

    # ---- concat(skip) -> conv_post -> GN -> LeakyReLU ------------------------
    hcat = jnp.concatenate([h.reshape(n, OUT_CH),
                            skip_ref[...].reshape(n, OUT_CH)], axis=-1)  # (n, 64)
    h2 = conv3(hcat, w_post)                                      # (n, 32) f32
    out = leaky(group_norm(h2.reshape(nb, l, OUT_CH), g2, b2))

    # ---- SE block ------------------------------------------------------------
    s = jnp.mean(out, axis=1)                                     # (nb, 32)
    z = jnp.maximum(jnp.dot(s, f1, preferred_element_type=jnp.float32), 0.0)
    scale = jax.nn.sigmoid(jnp.dot(z, f2, preferred_element_type=jnp.float32))
    o_ref[...] = out * scale[:, None, :]


# ---------------------------------------------------------------------------
# parameter packing: run ONCE at init (hoisted out of the jitted call path)
# ---------------------------------------------------------------------------
def pack_params(params):
    w_pre, g1, b1, w_post, g2, b2, fc1_w, fc2_w = params
    # (O, I, K) -> (K*I, O): rows [k*I:(k+1)*I] are the tap-k weight (I, O)
    wp = jnp.transpose(w_pre, (2, 1, 0)).reshape(KSIZE * IN_CH, OUT_CH)
    wq = jnp.transpose(w_post, (2, 1, 0)).reshape(KSIZE * 2 * OUT_CH, OUT_CH)
    # SE fc weights zero-padded to (32, 32) so the SE path has no 2-wide shapes
    f1 = jnp.zeros((OUT_CH, OUT_CH), jnp.float32).at[:, :CR].set(fc1_w.T)
    f2 = jnp.zeros((OUT_CH, OUT_CH), jnp.float32).at[:CR, :].set(fc2_w.T)
    gn = jnp.stack([g1, b1, g2, b2], axis=0)
    consts = jnp.concatenate([wp, wq, f1, f2, gn], axis=0).astype(jnp.float32)
    assert consts.shape == (CROWS, OUT_CH), consts.shape
    return consts


@jax.jit
def residual_up_block(x_ncl, skip_ncl, consts):
    """x: (B, in_ch, L_in), skip: (B, out_ch, L_skip) -> (B, out_ch, L_skip)."""
    b = x_ncl.shape[0]
    l_skip = skip_ncl.shape[-1]

    # zero-FLOP layout plumbing: only the nearest upsample stays in the
    # wrapper; all conv taps / im2col are built in-kernel.
    x_nlc = jnp.transpose(x_ncl, (0, 2, 1)).astype(jnp.float32)   # (B, L_in, Cin)
    x_up = jnp.repeat(x_nlc, STRIDE, axis=1)                      # nearest x STRIDE
    if x_up.shape[1] != l_skip:                                   # nearest resize
        idx = (np.arange(l_skip) * x_up.shape[1]) // l_skip
        x_up = x_up[:, idx, :]
    skip_nlc = jnp.transpose(skip_ncl, (0, 2, 1)).astype(jnp.float32)

    # whole batch in ONE grid step (do not split the tiny batch across cores)
    out_nlc = pl.pallas_call(
        _resup_kernel,
        out_shape=jax.ShapeDtypeStruct((b, l_skip, OUT_CH), jnp.float32),
        grid=(1,),
        in_specs=[
            pl.BlockSpec((b, l_skip, IN_CH), lambda i: (0, 0, 0)),
            pl.BlockSpec((b, l_skip, OUT_CH), lambda i: (0, 0, 0)),
            pl.BlockSpec((CROWS, OUT_CH), lambda i: (0, 0)),
        ],
        out_specs=pl.BlockSpec((b, l_skip, OUT_CH), lambda i: (0, 0, 0)),
        compiler_params=pltpu.CompilerParams(
            dimension_semantics=("arbitrary",)),
    )(x_up, skip_nlc, consts)

    # TODO(synk): lane-dense output store + in-kernel NCL transpose deferred;
    # output is 8 KB total so this transpose / masked-store cost is negligible.
    return jnp.transpose(out_nlc, (0, 2, 1))                      # (B, Cout, L_skip)


# ---------------------------------------------------------------------------
# pure-JAX reference (mirrors the PyTorch forward)
# ---------------------------------------------------------------------------
@jax.jit
def reference(x_ncl, skip_ncl, params):
    w_pre, g1, b1, w_post, g2, b2, fc1_w, fc2_w = params
    l_skip = skip_ncl.shape[-1]

    x = jnp.repeat(x_ncl, STRIDE, axis=2)
    if x.shape[-1] != l_skip:
        idx = (np.arange(l_skip) * x.shape[-1]) // l_skip
        x = x[:, :, idx]

    def conv1d(h, w):
        return lax.conv_general_dilated(h, w, (1,), [(PAD, PAD)],
                                        dimension_numbers=("NCH", "OIH", "NCH"))

    def gn(h, gamma, beta):
        bb, c, l = h.shape
        hg = h.reshape(bb, GROUPS, c // GROUPS, l)
        mean = hg.mean(axis=(2, 3), keepdims=True)
        var = hg.var(axis=(2, 3), keepdims=True)
        hg = (hg - mean) / jnp.sqrt(var + GN_EPS)
        return hg.reshape(bb, c, l) * gamma[None, :, None] + beta[None, :, None]

    leaky = lambda v: jnp.where(v > 0, v, SLOPE * v)

    h = leaky(gn(conv1d(x, w_pre), g1, b1))
    h = jnp.concatenate([h, skip_ncl], axis=1)
    h = leaky(gn(conv1d(h, w_post), g2, b2))
    s = jnp.mean(h, axis=2)                                          # (B, Cout)
    z = jnp.maximum(jnp.dot(s, fc1_w.T), 0.0)
    scale = jax.nn.sigmoid(jnp.dot(z, fc2_w.T))
    return h * scale[:, :, None]


# ---------------------------------------------------------------------------
def init_params(key):
    ks = jax.random.split(key, 8)
    w_pre = jax.random.normal(ks[0], (OUT_CH, IN_CH, KSIZE), jnp.float32) * 0.1
    g1 = 1.0 + 0.1 * jax.random.normal(ks[1], (OUT_CH,), jnp.float32)
    b1 = 0.1 * jax.random.normal(ks[2], (OUT_CH,), jnp.float32)
    w_post = jax.random.normal(ks[3], (OUT_CH, 2 * OUT_CH, KSIZE), jnp.float32) * 0.1
    g2 = 1.0 + 0.1 * jax.random.normal(ks[4], (OUT_CH,), jnp.float32)
    b2 = 0.1 * jax.random.normal(ks[5], (OUT_CH,), jnp.float32)
    fc1_w = jax.random.normal(ks[6], (CR, OUT_CH), jnp.float32) * 0.1   # (out, in)
    fc2_w = jax.random.normal(ks[7], (OUT_CH, CR), jnp.float32) * 0.1
    return (w_pre, g1, b1, w_post, g2, b2, fc1_w, fc2_w)


if __name__ == "__main__":
    key = jax.random.PRNGKey(0)
    kx, ksk, kp = jax.random.split(key, 3)
    x = jax.random.normal(kx, (B, IN_CH, L_IN), jnp.float32)
    skip = jax.random.normal(ksk, (B, OUT_CH, L_OUT), jnp.float32)
    params = init_params(kp)

    consts = pack_params(params)          # packed ONCE at init, not per call

    out = jax.block_until_ready(residual_up_block(x, skip, consts))
    ref = jax.block_until_ready(reference(x, skip, params))

    assert out.shape == (B, OUT_CH, L_OUT), out.shape
    # tolerance absorbs single-pass bf16 MXU products (conv matmuls); GroupNorm
    # statistics are now exact f32 on the VPU.
    np.testing.assert_allclose(np.asarray(out), np.asarray(ref),
                               rtol=1e-2, atol=1e-2)
    print("KERNEL_OK")
</pallas_src>

<mosaic_0001>
module attributes {stable_mosaic.version = 11 : i64} {
  func.func @_resup_kernel(%arg0: i32, %arg1: memref<2x32x16xf32, #tpu.memory_space<vmem>>, %arg2: memref<2x32x32xf32, #tpu.memory_space<vmem>>, %arg3: memref<308x32xf32, #tpu.memory_space<vmem>>, %arg4: memref<2x32x32xf32, #tpu.memory_space<vmem>>) attributes {dimension_semantics = [#tpu.dimension_semantics<arbitrary>], iteration_bounds = array<i64: 1>, scalar_prefetch = 0 : i64, scratch_operands = 0 : i64, tpu.core_type = #tpu.core_type<tc>, window_params = [{pipeline_mode = #tpu.pipeline_mode<synchronous>, transform_indices = @transform_0, window_bounds = array<i64: 2, 32, 16>}, {pipeline_mode = #tpu.pipeline_mode<synchronous>, transform_indices = @transform_1, window_bounds = array<i64: 2, 32, 32>}, {pipeline_mode = #tpu.pipeline_mode<synchronous>, transform_indices = @transform_2, window_bounds = array<i64: 308, 32>}, {pipeline_mode = #tpu.pipeline_mode<synchronous>, transform_indices = @transform_3, window_bounds = array<i64: 2, 32, 32>}]} {
    %c0 = arith.constant 0 : index
    %c0_0 = arith.constant 0 : index
    %0 = vector.load %arg3[%c0, %c0_0] : memref<308x32xf32, #tpu.memory_space<vmem>>, vector<48x32xf32>
    %1 = arith.truncf %0 : vector<48x32xf32> to vector<48x32xbf16>
    %c48 = arith.constant 48 : index
    %c0_1 = arith.constant 0 : index
    %2 = vector.load %arg3[%c48, %c0_1] : memref<308x32xf32, #tpu.memory_space<vmem>>, vector<192x32xf32>
    %3 = arith.truncf %2 : vector<192x32xf32> to vector<192x32xbf16>
    %c240 = arith.constant 240 : index
    %c0_2 = arith.constant 0 : index
    %4 = vector.load %arg3[%c240, %c0_2] : memref<308x32xf32, #tpu.memory_space<vmem>>, vector<32x32xf32>
    %c272 = arith.constant 272 : index
    %c0_3 = arith.constant 0 : index
    %5 = vector.load %arg3[%c272, %c0_3] : memref<308x32xf32, #tpu.memory_space<vmem>>, vector<32x32xf32>
    %c304 = arith.constant 304 : index
    %c0_4 = arith.constant 0 : index
    %6 = vector.load %arg3[%c304, %c0_4] : memref<308x32xf32, #tpu.memory_space<vmem>>, vector<4x32xf32>
    %7 = vector.extract_strided_slice %6 {offsets = [0, 0], sizes = [1, 32], strides = [1, 1]} : vector<4x32xf32> to vector<1x32xf32>
    %8 = vector.extract_strided_slice %6 {offsets = [1, 0], sizes = [1, 32], strides = [1, 1]} : vector<4x32xf32> to vector<1x32xf32>
    %9 = vector.extract_strided_slice %6 {offsets = [2, 0], sizes = [1, 32], strides = [1, 1]} : vector<4x32xf32> to vector<1x32xf32>
    %10 = vector.extract_strided_slice %6 {offsets = [3, 0], sizes = [1, 32], strides = [1, 1]} : vector<4x32xf32> to vector<1x32xf32>
    %11 = tpu.iota {dimensions = array<i32: 1>} : vector<2x32x1xi32>
    %12 = vector.shape_cast %11 : vector<2x32x1xi32> to vector<64x1xi32>
    %c0_i32 = arith.constant 0 : i32
    %13 = vector.broadcast %c0_i32 : i32 to vector<64x1xi32>
    %14 = arith.cmpi eq, %12, %13 : vector<64x1xi32>
    %c31_i32 = arith.constant 31 : i32
    %15 = vector.broadcast %c31_i32 : i32 to vector<64x1xi32>
    %16 = arith.cmpi eq, %12, %15 : vector<64x1xi32>
    %17 = tpu.iota {dimensions = array<i32: 1>} : vector<1x32xi32>
    %c0_i32_5 = arith.constant 0 : i32
    %18 = vector.broadcast %c0_i32_5 : i32 to vector<1x32xi32>
    %19 = arith.cmpi sge, %17, %18 : vector<1x32xi32>
    %c4_i32 = arith.constant 4 : i32
    %20 = vector.broadcast %c4_i32 : i32 to vector<1x32xi32>
    %21 = arith.cmpi slt, %17, %20 : vector<1x32xi32>
    %22 = arith.andi %19, %21 : vector<1x32xi1>
    %23 = arith.extui %22 : vector<1x32xi1> to vector<1x32xi32>
    %24 = arith.sitofp %23 : vector<1x32xi32> to vector<1x32xf32>
    %c4_i32_6 = arith.constant 4 : i32
    %25 = vector.broadcast %c4_i32_6 : i32 to vector<1x32xi32>
    %26 = arith.cmpi sge, %17, %25 : vector<1x32xi32>
    %c8_i32 = arith.constant 8 : i32
    %27 = vector.broadcast %c8_i32 : i32 to vector<1x32xi32>
    %28 = arith.cmpi slt, %17, %27 : vector<1x32xi32>
    %29 = arith.andi %26, %28 : vector<1x32xi1>
    %30 = arith.extui %29 : vector<1x32xi1> to vector<1x32xi32>
    %31 = arith.sitofp %30 : vector<1x32xi32> to vector<1x32xf32>
    %c8_i32_7 = arith.constant 8 : i32
    %32 = vector.broadcast %c8_i32_7 : i32 to vector<1x32xi32>
    %33 = arith.cmpi sge, %17, %32 : vector<1x32xi32>
    %c12_i32 = arith.constant 12 : i32
    %34 = vector.broadcast %c12_i32 : i32 to vector<1x32xi32>
    %35 = arith.cmpi slt, %17, %34 : vector<1x32xi32>
    %36 = arith.andi %33, %35 : vector<1x32xi1>
    %37 = arith.extui %36 : vector<1x32xi1> to vector<1x32xi32>
    %38 = arith.sitofp %37 : vector<1x32xi32> to vector<1x32xf32>
    %c12_i32_8 = arith.constant 12 : i32
    %39 = vector.broadcast %c12_i32_8 : i32 to vector<1x32xi32>
    %40 = arith.cmpi sge, %17, %39 : vector<1x32xi32>
    %c16_i32 = arith.constant 16 : i32
    %41 = vector.broadcast %c16_i32 : i32 to vector<1x32xi32>
    %42 = arith.cmpi slt, %17, %41 : vector<1x32xi32>
    %43 = arith.andi %40, %42 : vector<1x32xi1>
    %44 = arith.extui %43 : vector<1x32xi1> to vector<1x32xi32>
    %45 = arith.sitofp %44 : vector<1x32xi32> to vector<1x32xf32>
    %c16_i32_9 = arith.constant 16 : i32
    %46 = vector.broadcast %c16_i32_9 : i32 to vector<1x32xi32>
    %47 = arith.cmpi sge, %17, %46 : vector<1x32xi32>
    %c20_i32 = arith.constant 20 : i32
    %48 = vector.broadcast %c20_i32 : i32 to vector<1x32xi32>
    %49 = arith.cmpi slt, %17, %48 : vector<1x32xi32>
    %50 = arith.andi %47, %49 : vector<1x32xi1>
    %51 = arith.extui %50 : vector<1x32xi1> to vector<1x32xi32>
    %52 = arith.sitofp %51 : vector<1x32xi32> to vector<1x32xf32>
    %c20_i32_10 = arith.constant 20 : i32
    %53 = vector.broadcast %c20_i32_10 : i32 to vector<1x32xi32>
    %54 = arith.cmpi sge, %17, %53 : vector<1x32xi32>
    %c24_i32 = arith.constant 24 : i32
    %55 = vector.broadcast %c24_i32 : i32 to vector<1x32xi32>
    %56 = arith.cmpi slt, %17, %55 : vector<1x32xi32>
    %57 = arith.andi %54, %56 : vector<1x32xi1>
    %58 = arith.extui %57 : vector<1x32xi1> to vector<1x32xi32>
    %59 = arith.sitofp %58 : vector<1x32xi32> to vector<1x32xf32>
    %c24_i32_11 = arith.constant 24 : i32
    %60 = vector.broadcast %c24_i32_11 : i32 to vector<1x32xi32>
    %61 = arith.cmpi sge, %17, %60 : vector<1x32xi32>
    %c28_i32 = arith.constant 28 : i32
    %62 = vector.broadcast %c28_i32 : i32 to vector<1x32xi32>
    %63 = arith.cmpi slt, %17, %62 : vector<1x32xi32>
    %64 = arith.andi %61, %63 : vector<1x32xi1>
    %65 = arith.extui %64 : vector<1x32xi1> to vector<1x32xi32>
    %66 = arith.sitofp %65 : vector<1x32xi32> to vector<1x32xf32>
    %c28_i32_12 = arith.constant 28 : i32
    %67 = vector.broadcast %c28_i32_12 : i32 to vector<1x32xi32>
    %68 = arith.cmpi sge, %17, %67 : vector<1x32xi32>
    %c32_i32 = arith.constant 32 : i32
    %69 = vector.broadcast %c32_i32 : i32 to vector<1x32xi32>
    %70 = arith.cmpi slt, %17, %69 : vector<1x32xi32>
    %71 = arith.andi %68, %70 : vector<1x32xi1>
    %72 = arith.extui %71 : vector<1x32xi1> to vector<1x32xi32>
    %73 = arith.sitofp %72 : vector<1x32xi32> to vector<1x32xf32>
    %c0_13 = arith.constant 0 : index
    %c0_14 = arith.constant 0 : index
    %c0_15 = arith.constant 0 : index
    %74 = vector.load %arg1[%c0_13, %c0_14, %c0_15] : memref<2x32x16xf32, #tpu.memory_space<vmem>>, vector<2x32x16xf32>
    %75 = vector.shape_cast %74 : vector<2x32x16xf32> to vector<64x16xf32>
    %c1_i32 = arith.constant 1 : i32
    %76 = tpu.dynamic_rotate %75 by %c1_i32 dim 0 : vector<64x16xf32>, i32 -> vector<64x16xf32>
    %c63_i32 = arith.constant 63 : i32
    %77 = tpu.dynamic_rotate %75 by %c63_i32 dim 0 : vector<64x16xf32>, i32 -> vector<64x16xf32>
    %cst = arith.constant 0.000000e+00 : f32
    %78 = vector.shape_cast %14 : vector<64x1xi1> to vector<64x1xi1>
    %79 = vector.broadcast %78 : vector<64x1xi1> to vector<64x16xi1>
    %80 = vector.broadcast %cst : f32 to vector<64x16xf32>
    %81 = arith.select %79, %80, %76 : vector<64x16xi1>, vector<64x16xf32>
    %cst_16 = arith.constant 0.000000e+00 : f32
    %82 = vector.shape_cast %16 : vector<64x1xi1> to vector<64x1xi1>
    %83 = vector.broadcast %82 : vector<64x1xi1> to vector<64x16xi1>
    %84 = vector.broadcast %cst_16 : f32 to vector<64x16xf32>
    %85 = arith.select %83, %84, %77 : vector<64x16xi1>, vector<64x16xf32>
    %86 = arith.truncf %81 : vector<64x16xf32> to vector<64x16xbf16>
    %87 = vector.extract_strided_slice %1 {offsets = [0, 0], sizes = [16, 32], strides = [1, 1]} : vector<48x32xbf16> to vector<16x32xbf16>
    %cst_17 = arith.constant dense<0.000000e+00> : vector<64x32xf32>
    %88 = tpu.matmul %86, %87, %cst_17 {dimension_numbers = #tpu.dot_dimension_numbers<[1], [0], [0], [1], [0, 0, 1, 1], [], []>} : vector<64x16xbf16>, vector<16x32xbf16>, vector<64x32xf32> -> vector<64x32xf32>
    %89 = arith.truncf %75 : vector<64x16xf32> to vector<64x16xbf16>
    %90 = vector.extract_strided_slice %1 {offsets = [16, 0], sizes = [16, 32], strides = [1, 1]} : vector<48x32xbf16> to vector<16x32xbf16>
    %cst_18 = arith.constant dense<0.000000e+00> : vector<64x32xf32>
    %91 = tpu.matmul %89, %90, %cst_18 {dimension_numbers = #tpu.dot_dimension_numbers<[1], [0], [0], [1], [0, 0, 1, 1], [], []>} : vector<64x16xbf16>, vector<16x32xbf16>, vector<64x32xf32> -> vector<64x32xf32>
    %92 = arith.addf %88, %91 : vector<64x32xf32>
    %93 = arith.truncf %85 : vector<64x16xf32> to vector<64x16xbf16>
    %94 = vector.extract_strided_slice %1 {offsets = [32, 0], sizes = [16, 32], strides = [1, 1]} : vector<48x32xbf16> to vector<16x32xbf16>
    %cst_19 = arith.constant dense<0.000000e+00> : vector<64x32xf32>
    %95 = tpu.matmul %93, %94, %cst_19 {dimension_numbers = #tpu.dot_dimension_numbers<[1], [0], [0], [1], [0, 0, 1, 1], [], []>} : vector<64x16xbf16>, vector<16x32xbf16>, vector<64x32xf32> -> vector<64x32xf32>
    %96 = arith.addf %92, %95 : vector<64x32xf32>
    %97 = vector.shape_cast %96 : vector<64x32xf32> to vector<2x32x32xf32>
    %cst_20 = arith.constant dense<0.000000e+00> : vector<2x32xf32>
    %98 = vector.multi_reduction <add>, %97, %cst_20 [1] : vector<2x32x32xf32> to vector<2x32xf32>
    %99 = arith.mulf %97, %97 : vector<2x32x32xf32>
    %cst_21 = arith.constant dense<0.000000e+00> : vector<2x32xf32>
    %100 = vector.multi_reduction <add>, %99, %cst_21 [1] : vector<2x32x32xf32> to vector<2x32xf32>
    %101 = tpu.concatenate %98, %100 in 0 : vector<2x32xf32>, vector<2x32xf32> -> vector<4x32xf32>
    %cst_22 = arith.constant 0.000000e+00 : f32
    %102 = vector.broadcast %cst_22 : f32 to vector<4x32xf32>
    %103 = vector.broadcast %24 : vector<1x32xf32> to vector<4x32xf32>
    %104 = arith.mulf %101, %103 : vector<4x32xf32>
    %cst_23 = arith.constant dense<0.000000e+00> : vector<4xf32>
    %105 = vector.multi_reduction <add>, %104, %cst_23 [1] : vector<4x32xf32> to vector<4xf32>
    %106 = vector.shape_cast %105 : vector<4xf32> to vector<4x1xf32>
    %107 = vector.broadcast %106 : vector<4x1xf32> to vector<4x32xf32>
    %108 = vector.broadcast %24 : vector<1x32xf32> to vector<4x32xf32>
    %109 = arith.mulf %107, %108 : vector<4x32xf32>
    %110 = arith.addf %102, %109 : vector<4x32xf32>
    %111 = vector.broadcast %31 : vector<1x32xf32> to vector<4x32xf32>
    %112 = arith.mulf %101, %111 : vector<4x32xf32>
    %cst_24 = arith.constant dense<0.000000e+00> : vector<4xf32>
    %113 = vector.multi_reduction <add>, %112, %cst_24 [1] : vector<4x32xf32> to vector<4xf32>
    %114 = vector.shape_cast %113 : vector<4xf32> to vector<4x1xf32>
    %115 = vector.broadcast %114 : vector<4x1xf32> to vector<4x32xf32>
    %116 = vector.broadcast %31 : vector<1x32xf32> to vector<4x32xf32>
    %117 = arith.mulf %115, %116 : vector<4x32xf32>
    %118 = arith.addf %110, %117 : vector<4x32xf32>
    %119 = vector.broadcast %38 : vector<1x32xf32> to vector<4x32xf32>
    %120 = arith.mulf %101, %119 : vector<4x32xf32>
    %cst_25 = arith.constant dense<0.000000e+00> : vector<4xf32>
    %121 = vector.multi_reduction <add>, %120, %cst_25 [1] : vector<4x32xf32> to vector<4xf32>
    %122 = vector.shape_cast %121 : vector<4xf32> to vector<4x1xf32>
    %123 = vector.broadcast %122 : vector<4x1xf32> to vector<4x32xf32>
    %124 = vector.broadcast %38 : vector<1x32xf32> to vector<4x32xf32>
    %125 = arith.mulf %123, %124 : vector<4x32xf32>
    %126 = arith.addf %118, %125 : vector<4x32xf32>
    %127 = vector.broadcast %45 : vector<1x32xf32> to vector<4x32xf32>
    %128 = arith.mulf %101, %127 : vector<4x32xf32>
    %cst_26 = arith.constant dense<0.000000e+00> : vector<4xf32>
    %129 = vector.multi_reduction <add>, %128, %cst_26 [1] : vector<4x32xf32> to vector<4xf32>
    %130 = vector.shape_cast %129 : vector<4xf32> to vector<4x1xf32>
    %131 = vector.broadcast %130 : vector<4x1xf32> to vector<4x32xf32>
    %132 = vector.broadcast %45 : vector<1x32xf32> to vector<4x32xf32>
    %133 = arith.mulf %131, %132 : vector<4x32xf32>
    %134 = arith.addf %126, %133 : vector<4x32xf32>
    %135 = vector.broadcast %52 : vector<1x32xf32> to vector<4x32xf32>
    %136 = arith.mulf %101, %135 : vector<4x32xf32>
    %cst_27 = arith.constant dense<0.000000e+00> : vector<4xf32>
    %137 = vector.multi_reduction <add>, %136, %cst_27 [1] : vector<4x32xf32> to vector<4xf32>
    %138 = vector.shape_cast %137 : vector<4xf32> to vector<4x1xf32>
    %139 = vector.broadcast %138 : vector<4x1xf32> to vector<4x32xf32>
    %140 = vector.broadcast %52 : vector<1x32xf32> to vector<4x32xf32>
    %141 = arith.mulf %139, %140 : vector<4x32xf32>
    %142 = arith.addf %134, %141 : vector<4x32xf32>
    %143 = vector.broadcast %59 : vector<1x32xf32> to vector<4x32xf32>
    %144 = arith.mulf %101, %143 : vector<4x32xf32>
    %cst_28 = arith.constant dense<0.000000e+00> : vector<4xf32>
    %145 = vector.multi_reduction <add>, %144, %cst_28 [1] : vector<4x32xf32> to vector<4xf32>
    %146 = vector.shape_cast %145 : vector<4xf32> to vector<4x1xf32>
    %147 = vector.broadcast %146 : vector<4x1xf32> to vector<4x32xf32>
    %148 = vector.broadcast %59 : vector<1x32xf32> to vector<4x32xf32>
    %149 = arith.mulf %147, %148 : vector<4x32xf32>
    %150 = arith.addf %142, %149 : vector<4x32xf32>
    %151 = vector.broadcast %66 : vector<1x32xf32> to vector<4x32xf32>
    %152 = arith.mulf %101, %151 : vector<4x32xf32>
    %cst_29 = arith.constant dense<0.000000e+00> : vector<4xf32>
    %153 = vector.multi_reduction <add>, %152, %cst_29 [1] : vector<4x32xf32> to vector<4xf32>
    %154 = vector.shape_cast %153 : vector<4xf32> to vector<4x1xf32>
    %155 = vector.broadcast %154 : vector<4x1xf32> to vector<4x32xf32>
    %156 = vector.broadcast %66 : vector<1x32xf32> to vector<4x32xf32>
    %157 = arith.mulf %155, %156 : vector<4x32xf32>
    %158 = arith.addf %150, %157 : vector<4x32xf32>
    %159 = vector.broadcast %73 : vector<1x32xf32> to vector<4x32xf32>
    %160 = arith.mulf %101, %159 : vector<4x32xf32>
    %cst_30 = arith.constant dense<0.000000e+00> : vector<4xf32>
    %161 = vector.multi_reduction <add>, %160, %cst_30 [1] : vector<4x32xf32> to vector<4xf32>
    %162 = vector.shape_cast %161 : vector<4xf32> to vector<4x1xf32>
    %163 = vector.broadcast %162 : vector<4x1xf32> to vector<4x32xf32>
    %164 = vector.broadcast %73 : vector<1x32xf32> to vector<4x32xf32>
    %165 = arith.mulf %163, %164 : vector<4x32xf32>
    %166 = arith.addf %158, %165 : vector<4x32xf32>
    %cst_31 = arith.constant 7.812500e-03 : f32
    %167 = vector.broadcast %cst_31 : f32 to vector<4x32xf32>
    %168 = arith.mulf %166, %167 : vector<4x32xf32>
    %169 = vector.extract_strided_slice %168 {offsets = [0, 0], sizes = [2, 32], strides = [1, 1]} : vector<4x32xf32> to vector<2x32xf32>
    %170 = vector.extract_strided_slice %168 {offsets = [2, 0], sizes = [2, 32], strides = [1, 1]} : vector<4x32xf32> to vector<2x32xf32>
    %171 = arith.mulf %169, %169 : vector<2x32xf32>
    %172 = arith.subf %170, %171 : vector<2x32xf32>
    %cst_32 = arith.constant 0.000000e+00 : f32
    %173 = vector.broadcast %cst_32 : f32 to vector<2x32xf32>
    %174 = arith.maximumf %172, %173 : vector<2x32xf32>
    %cst_33 = arith.constant 9.99999974E-6 : f32
    %175 = vector.broadcast %cst_33 : f32 to vector<2x32xf32>
    %176 = arith.addf %174, %175 : vector<2x32xf32>
    %177 = math.rsqrt %176 : vector<2x32xf32>
    %178 = vector.shape_cast %169 : vector<2x32xf32> to vector<2x1x32xf32>
    %179 = vector.broadcast %178 : vector<2x1x32xf32> to vector<2x32x32xf32>
    %180 = arith.subf %97, %179 : vector<2x32x32xf32>
    %181 = vector.shape_cast %177 : vector<2x32xf32> to vector<2x1x32xf32>
    %182 = vector.shape_cast %7 : vector<1x32xf32> to vector<1x1x32xf32>
    %183 = vector.broadcast %182 : vector<1x1x32xf32> to vector<2x1x32xf32>
    %184 = arith.mulf %181, %183 : vector<2x1x32xf32>
    %185 = vector.broadcast %184 : vector<2x1x32xf32> to vector<2x32x32xf32>
    %186 = arith.mulf %180, %185 : vector<2x32x32xf32>
    %187 = vector.shape_cast %8 : vector<1x32xf32> to vector<1x1x32xf32>
    %188 = vector.broadcast %187 : vector<1x1x32xf32> to vector<2x32x32xf32>
    %189 = arith.addf %186, %188 : vector<2x32x32xf32>
    %cst_34 = arith.constant 0.000000e+00 : f32
    %190 = vector.broadcast %cst_34 : f32 to vector<2x32x32xf32>
    %191 = arith.cmpf ogt, %189, %190 : vector<2x32x32xf32>
    %cst_35 = arith.constant 2.000000e-01 : f32
    %192 = vector.broadcast %cst_35 : f32 to vector<2x32x32xf32>
    %193 = arith.mulf %192, %189 : vector<2x32x32xf32>
    %194 = arith.select %191, %189, %193 : vector<2x32x32xi1>, vector<2x32x32xf32>
    %195 = vector.shape_cast %194 : vector<2x32x32xf32> to vector<64x32xf32>
    %c0_36 = arith.constant 0 : index
    %c0_37 = arith.constant 0 : index
    %c0_38 = arith.constant 0 : index
    %196 = vector.load %arg2[%c0_36, %c0_37, %c0_38] : memref<2x32x32xf32, #tpu.memory_space<vmem>>, vector<2x32x32xf32>
    %197 = vector.shape_cast %196 : vector<2x32x32xf32> to vector<64x32xf32>
    %198 = tpu.concatenate %195, %197 in 1 : vector<64x32xf32>, vector<64x32xf32> -> vector<64x64xf32>
    %c1_i32_39 = arith.constant 1 : i32
    %199 = tpu.dynamic_rotate %198 by %c1_i32_39 dim 0 : vector<64x64xf32>, i32 -> vector<64x64xf32>
    %c63_i32_40 = arith.constant 63 : i32
    %200 = tpu.dynamic_rotate %198 by %c63_i32_40 dim 0 : vector<64x64xf32>, i32 -> vector<64x64xf32>
    %cst_41 = arith.constant 0.000000e+00 : f32
    %201 = vector.shape_cast %14 : vector<64x1xi1> to vector<64x1xi1>
    %202 = vector.broadcast %201 : vector<64x1xi1> to vector<64x64xi1>
    %203 = vector.broadcast %cst_41 : f32 to vector<64x64xf32>
    %204 = arith.select %202, %203, %199 : vector<64x64xi1>, vector<64x64xf32>
    %cst_42 = arith.constant 0.000000e+00 : f32
    %205 = vector.shape_cast %16 : vector<64x1xi1> to vector<64x1xi1>
    %206 = vector.broadcast %205 : vector<64x1xi1> to vector<64x64xi1>
    %207 = vector.broadcast %cst_42 : f32 to vector<64x64xf32>
    %208 = arith.select %206, %207, %200 : vector<64x64xi1>, vector<64x64xf32>
    %209 = arith.truncf %204 : vector<64x64xf32> to vector<64x64xbf16>
    %210 = vector.extract_strided_slice %3 {offsets = [0, 0], sizes = [64, 32], strides = [1, 1]} : vector<192x32xbf16> to vector<64x32xbf16>
    %cst_43 = arith.constant dense<0.000000e+00> : vector<64x32xf32>
    %211 = tpu.matmul %209, %210, %cst_43 {dimension_numbers = #tpu.dot_dimension_numbers<[1], [0], [0], [1], [0, 0, 1, 1], [], []>} : vector<64x64xbf16>, vector<64x32xbf16>, vector<64x32xf32> -> vector<64x32xf32>
    %212 = arith.truncf %198 : vector<64x64xf32> to vector<64x64xbf16>
    %213 = vector.extract_strided_slice %3 {offsets = [64, 0], sizes = [64, 32], strides = [1, 1]} : vector<192x32xbf16> to vector<64x32xbf16>
    %cst_44 = arith.constant dense<0.000000e+00> : vector<64x32xf32>
    %214 = tpu.matmul %212, %213, %cst_44 {dimension_numbers = #tpu.dot_dimension_numbers<[1], [0], [0], [1], [0, 0, 1, 1], [], []>} : vector<64x64xbf16>, vector<64x32xbf16>, vector<64x32xf32> -> vector<64x32xf32>
    %215 = arith.addf %211, %214 : vector<64x32xf32>
    %216 = arith.truncf %208 : vector<64x64xf32> to vector<64x64xbf16>
    %217 = vector.extract_strided_slice %3 {offsets = [128, 0], sizes = [64, 32], strides = [1, 1]} : vector<192x32xbf16> to vector<64x32xbf16>
    %cst_45 = arith.constant dense<0.000000e+00> : vector<64x32xf32>
    %218 = tpu.matmul %216, %217, %cst_45 {dimension_numbers = #tpu.dot_dimension_numbers<[1], [0], [0], [1], [0, 0, 1, 1], [], []>} : vector<64x64xbf16>, vector<64x32xbf16>, vector<64x32xf32> -> vector<64x32xf32>
    %219 = arith.addf %215, %218 : vector<64x32xf32>
    %220 = vector.shape_cast %219 : vector<64x32xf32> to vector<2x32x32xf32>
    %cst_46 = arith.constant dense<0.000000e+00> : vector<2x32xf32>
    %221 = vector.multi_reduction <add>, %220, %cst_46 [1] : vector<2x32x32xf32> to vector<2x32xf32>
    %222 = arith.mulf %220, %220 : vector<2x32x32xf32>
    %cst_47 = arith.constant dense<0.000000e+00> : vector<2x32xf32>
    %223 = vector.multi_reduction <add>, %222, %cst_47 [1] : vector<2x32x32xf32> to vector<2x32xf32>
    %224 = tpu.concatenate %221, %223 in 0 : vector<2x32xf32>, vector<2x32xf32> -> vector<4x32xf32>
    %cst_48 = arith.constant 0.000000e+00 : f32
    %225 = vector.broadcast %cst_48 : f32 to vector<4x32xf32>
    %226 = vector.broadcast %24 : vector<1x32xf32> to vector<4x32xf32>
    %227 = arith.mulf %224, %226 : vector<4x32xf32>
    %cst_49 = arith.constant dense<0.000000e+00> : vector<4xf32>
    %228 = vector.multi_reduction <add>, %227, %cst_49 [1] : vector<4x32xf32> to vector<4xf32>
    %229 = vector.shape_cast %228 : vector<4xf32> to vector<4x1xf32>
    %230 = vector.broadcast %229 : vector<4x1xf32> to vector<4x32xf32>
    %231 = vector.broadcast %24 : vector<1x32xf32> to vector<4x32xf32>
    %232 = arith.mulf %230, %231 : vector<4x32xf32>
    %233 = arith.addf %225, %232 : vector<4x32xf32>
    %234 = vector.broadcast %31 : vector<1x32xf32> to vector<4x32xf32>
    %235 = arith.mulf %224, %234 : vector<4x32xf32>
    %cst_50 = arith.constant dense<0.000000e+00> : vector<4xf32>
    %236 = vector.multi_reduction <add>, %235, %cst_50 [1] : vector<4x32xf32> to vector<4xf32>
    %237 = vector.shape_cast %236 : vector<4xf32> to vector<4x1xf32>
    %238 = vector.broadcast %237 : vector<4x1xf32> to vector<4x32xf32>
    %239 = vector.broadcast %31 : vector<1x32xf32> to vector<4x32xf32>
    %240 = arith.mulf %238, %239 : vector<4x32xf32>
    %241 = arith.addf %233, %240 : vector<4x32xf32>
    %242 = vector.broadcast %38 : vector<1x32xf32> to vector<4x32xf32>
    %243 = arith.mulf %224, %242 : vector<4x32xf32>
    %cst_51 = arith.constant dense<0.000000e+00> : vector<4xf32>
    %244 = vector.multi_reduction <add>, %243, %cst_51 [1] : vector<4x32xf32> to vector<4xf32>
    %245 = vector.shape_cast %244 : vector<4xf32> to vector<4x1xf32>
    %246 = vector.broadcast %245 : vector<4x1xf32> to vector<4x32xf32>
    %247 = vector.broadcast %38 : vector<1x32xf32> to vector<4x32xf32>
    %248 = arith.mulf %246, %247 : vector<4x32xf32>
    %249 = arith.addf %241, %248 : vector<4x32xf32>
    %250 = vector.broadcast %45 : vector<1x32xf32> to vector<4x32xf32>
    %251 = arith.mulf %224, %250 : vector<4x32xf32>
    %cst_52 = arith.constant dense<0.000000e+00> : vector<4xf32>
    %252 = vector.multi_reduction <add>, %251, %cst_52 [1] : vector<4x32xf32> to vector<4xf32>
    %253 = vector.shape_cast %252 : vector<4xf32> to vector<4x1xf32>
    %254 = vector.broadcast %253 : vector<4x1xf32> to vector<4x32xf32>
    %255 = vector.broadcast %45 : vector<1x32xf32> to vector<4x32xf32>
    %256 = arith.mulf %254, %255 : vector<4x32xf32>
    %257 = arith.addf %249, %256 : vector<4x32xf32>
    %258 = vector.broadcast %52 : vector<1x32xf32> to vector<4x32xf32>
    %259 = arith.mulf %224, %258 : vector<4x32xf32>
    %cst_53 = arith.constant dense<0.000000e+00> : vector<4xf32>
    %260 = vector.multi_reduction <add>, %259, %cst_53 [1] : vector<4x32xf32> to vector<4xf32>
    %261 = vector.shape_cast %260 : vector<4xf32> to vector<4x1xf32>
    %262 = vector.broadcast %261 : vector<4x1xf32> to vector<4x32xf32>
    %263 = vector.broadcast %52 : vector<1x32xf32> to vector<4x32xf32>
    %264 = arith.mulf %262, %263 : vector<4x32xf32>
    %265 = arith.addf %257, %264 : vector<4x32xf32>
    %266 = vector.broadcast %59 : vector<1x32xf32> to vector<4x32xf32>
    %267 = arith.mulf %224, %266 : vector<4x32xf32>
    %cst_54 = arith.constant dense<0.000000e+00> : vector<4xf32>
    %268 = vector.multi_reduction <add>, %267, %cst_54 [1] : vector<4x32xf32> to vector<4xf32>
    %269 = vector.shape_cast %268 : vector<4xf32> to vector<4x1xf32>
    %270 = vector.broadcast %269 : vector<4x1xf32> to vector<4x32xf32>
    %271 = vector.broadcast %59 : vector<1x32xf32> to vector<4x32xf32>
    %272 = arith.mulf %270, %271 : vector<4x32xf32>
    %273 = arith.addf %265, %272 : vector<4x32xf32>
    %274 = vector.broadcast %66 : vector<1x32xf32> to vector<4x32xf32>
    %275 = arith.mulf %224, %274 : vector<4x32xf32>
    %cst_55 = arith.constant dense<0.000000e+00> : vector<4xf32>
    %276 = vector.multi_reduction <add>, %275, %cst_55 [1] : vector<4x32xf32> to vector<4xf32>
    %277 = vector.shape_cast %276 : vector<4xf32> to vector<4x1xf32>
    %278 = vector.broadcast %277 : vector<4x1xf32> to vector<4x32xf32>
    %279 = vector.broadcast %66 : vector<1x32xf32> to vector<4x32xf32>
    %280 = arith.mulf %278, %279 : vector<4x32xf32>
    %281 = arith.addf %273, %280 : vector<4x32xf32>
    %282 = vector.broadcast %73 : vector<1x32xf32> to vector<4x32xf32>
    %283 = arith.mulf %224, %282 : vector<4x32xf32>
    %cst_56 = arith.constant dense<0.000000e+00> : vector<4xf32>
    %284 = vector.multi_reduction <add>, %283, %cst_56 [1] : vector<4x32xf32> to vector<4xf32>
    %285 = vector.shape_cast %284 : vector<4xf32> to vector<4x1xf32>
    %286 = vector.broadcast %285 : vector<4x1xf32> to vector<4x32xf32>
    %287 = vector.broadcast %73 : vector<1x32xf32> to vector<4x32xf32>
    %288 = arith.mulf %286, %287 : vector<4x32xf32>
    %289 = arith.addf %281, %288 : vector<4x32xf32>
    %cst_57 = arith.constant 7.812500e-03 : f32
    %290 = vector.broadcast %cst_57 : f32 to vector<4x32xf32>
    %291 = arith.mulf %289, %290 : vector<4x32xf32>
    %292 = vector.extract_strided_slice %291 {offsets = [0, 0], sizes = [2, 32], strides = [1, 1]} : vector<4x32xf32> to vector<2x32xf32>
    %293 = vector.extract_strided_slice %291 {offsets = [2, 0], sizes = [2, 32], strides = [1, 1]} : vector<4x32xf32> to vector<2x32xf32>
    %294 = arith.mulf %292, %292 : vector<2x32xf32>
    %295 = arith.subf %293, %294 : vector<2x32xf32>
    %cst_58 = arith.constant 0.000000e+00 : f32
    %296 = vector.broadcast %cst_58 : f32 to vector<2x32xf32>
    %297 = arith.maximumf %295, %296 : vector<2x32xf32>
    %cst_59 = arith.constant 9.99999974E-6 : f32
    %298 = vector.broadcast %cst_59 : f32 to vector<2x32xf32>
    %299 = arith.addf %297, %298 : vector<2x32xf32>
    %300 = math.rsqrt %299 : vector<2x32xf32>
    %301 = vector.shape_cast %292 : vector<2x32xf32> to vector<2x1x32xf32>
    %302 = vector.broadcast %301 : vector<2x1x32xf32> to vector<2x32x32xf32>
    %303 = arith.subf %220, %302 : vector<2x32x32xf32>
    %304 = vector.shape_cast %300 : vector<2x32xf32> to vector<2x1x32xf32>
    %305 = vector.shape_cast %9 : vector<1x32xf32> to vector<1x1x32xf32>
    %306 = vector.broadcast %305 : vector<1x1x32xf32> to vector<2x1x32xf32>
    %307 = arith.mulf %304, %306 : vector<2x1x32xf32>
    %308 = vector.broadcast %307 : vector<2x1x32xf32> to vector<2x32x32xf32>
    %309 = arith.mulf %303, %308 : vector<2x32x32xf32>
    %310 = vector.shape_cast %10 : vector<1x32xf32> to vector<1x1x32xf32>
    %311 = vector.broadcast %310 : vector<1x1x32xf32> to vector<2x32x32xf32>
    %312 = arith.addf %309, %311 : vector<2x32x32xf32>
    %cst_60 = arith.constant 0.000000e+00 : f32
    %313 = vector.broadcast %cst_60 : f32 to vector<2x32x32xf32>
    %314 = arith.cmpf ogt, %312, %313 : vector<2x32x32xf32>
    %cst_61 = arith.constant 2.000000e-01 : f32
    %315 = vector.broadcast %cst_61 : f32 to vector<2x32x32xf32>
    %316 = arith.mulf %315, %312 : vector<2x32x32xf32>
    %317 = arith.select %314, %312, %316 : vector<2x32x32xi1>, vector<2x32x32xf32>
    %cst_62 = arith.constant dense<0.000000e+00> : vector<2x32xf32>
    %318 = vector.multi_reduction <add>, %317, %cst_62 [1] : vector<2x32x32xf32> to vector<2x32xf32>
    %cst_63 = arith.constant 3.200000e+01 : f32
    %319 = vector.broadcast %cst_63 : f32 to vector<2x32xf32>
    %320 = arith.divf %318, %319 : vector<2x32xf32>
    %cst_64 = arith.constant dense<0.000000e+00> : vector<2x32xf32>
    %321 = tpu.matmul %320, %4, %cst_64 {dimension_numbers = #tpu.dot_dimension_numbers<[1], [0], [0], [1], [0, 0, 1, 1], [], []>} : vector<2x32xf32>, vector<32x32xf32>, vector<2x32xf32> -> vector<2x32xf32>
    %cst_65 = arith.constant 0.000000e+00 : f32
    %322 = vector.broadcast %cst_65 : f32 to vector<2x32xf32>
    %323 = arith.maximumf %321, %322 : vector<2x32xf32>
    %cst_66 = arith.constant dense<0.000000e+00> : vector<2x32xf32>
    %324 = tpu.matmul %323, %5, %cst_66 {dimension_numbers = #tpu.dot_dimension_numbers<[1], [0], [0], [1], [0, 0, 1, 1], [], []>} : vector<2x32xf32>, vector<32x32xf32>, vector<2x32xf32> -> vector<2x32xf32>
    %325 = arith.negf %324 : vector<2x32xf32>
    %326 = math.exp %325 : vector<2x32xf32>
    %cst_67 = arith.constant 1.000000e+00 : f32
    %327 = vector.broadcast %cst_67 : f32 to vector<2x32xf32>
    %328 = arith.addf %327, %326 : vector<2x32xf32>
    %329 = arith.divf %327, %328 : vector<2x32xf32>
    %330 = vector.shape_cast %329 : vector<2x32xf32> to vector<2x1x32xf32>
    %331 = vector.broadcast %330 : vector<2x1x32xf32> to vector<2x32x32xf32>
    %332 = arith.mulf %317, %331 : vector<2x32x32xf32>
    %c0_68 = arith.constant 0 : index
    %c0_69 = arith.constant 0 : index
    %c0_70 = arith.constant 0 : index
    %333 = vector.load %arg4[%c0_68, %c0_69, %c0_70] : memref<2x32x32xf32, #tpu.memory_space<vmem>>, vector<2x32x32xf32>
    tpu.vector_store %arg4[%c0_68, %c0_69, %c0_70], %332 {strides = array<i32>} : memref<2x32x32xf32, #tpu.memory_space<vmem>>, vector<2x32x32xf32>,
    return
  }
  func.func @transform_0(%arg0: i32) -> (i32, i32, i32) {
    %c0_i32 = arith.constant 0 : i32
    %c0_i32_0 = arith.constant 0 : i32
    %c0_i32_1 = arith.constant 0 : i32
    %c0_i32_2 = arith.constant 0 : i32
    return %c0_i32, %c0_i32_0, %c0_i32_1 : i32, i32, i32
  }
  func.func @transform_1(%arg0: i32) -> (i32, i32, i32) {
    %c0_i32 = arith.constant 0 : i32
    %c0_i32_0 = arith.constant 0 : i32
    %c0_i32_1 = arith.constant 0 : i32
    %c0_i32_2 = arith.constant 0 : i32
    return %c0_i32, %c0_i32_0, %c0_i32_1 : i32, i32, i32
  }
  func.func @transform_2(%arg0: i32) -> (i32, i32) {
    %c0_i32 = arith.constant 0 : i32
    %c0_i32_0 = arith.constant 0 : i32
    %c0_i32_1 = arith.constant 0 : i32
    return %c0_i32, %c0_i32_0 : i32, i32
  }
  func.func @transform_3(%arg0: i32) -> (i32, i32, i32) {
    %c0_i32 = arith.constant 0 : i32
    %c0_i32_0 = arith.constant 0 : i32
    %c0_i32_1 = arith.constant 0 : i32
    %c0_i32_2 = arith.constant 0 : i32
    return %c0_i32, %c0_i32_0, %c0_i32_1 : i32, i32, i32
  }
}

</mosaic_0001>

<bundles_post_ra>
// kernel: residual_up_block.1
= control target key start
LH: loop header
LB: loop body
LE: loop exit
PB: predicated region body
PF: predicated region fallthrough
CT: control target
= control target key end

     0   :  { %v69_v0 = vlaneseq  ;;  %vm206_vm0 = vcmask 130048   ;;  %vm450_vm5 = vcmask 261120   ;;  %vm513_vm10 = vcmask 1041409   ;;  %s1823_s24 = smov 32   ;;  %s2551_s2 = inlined_call_operand.vmem [shape: f32[308,32], index: 2, kind: input, shape index: {}]   ;;  %s2552_s0 = inlined_call_operand.vmem [shape: f32[2,32,16], index: 0, kind: input, shape index: {}]   ;;  %s2553_s1 = inlined_call_operand.vmem [shape: f32[2,32,32], index: 1, kind: input, shape index: {}]   ;;  %s2554_s3 = inlined_call_operand.vmem [shape: f32[2,32,32], index: 3, kind: output, shape index: {}]  }
   0x1   :  { %v17_v1 = vld [vmem:[%s2551_s2 + $0x10] sm:$0xff]  ;;  %v18_v2 = vld [vmem:[%s2551_s2 + $0x18] sm:$0xff]  ;;  %v1856_v3 = vld [vmem:[%s2552_s0] sm:$0xff]  ;;  %vm2559_vm15 = vcmask 1043459  }
   0x2   :  { %v22_v4 = vpack.c.bf16 %v18_v2, %v17_v1  ;;  %v1861_v5 = vld [vmem:[%s2552_s0 + $0x8] sm:$0xff]  ;;  %v1866_v6 = vld [vmem:[%s2552_s0 + $0x10] sm:$0xff]  ;;  %v1871_v7 = vld [vmem:[%s2552_s0 + $0x18] sm:$0xff]  ;;  %v1876_v9 = vshrl.u32 %v69_v0, 7  ;;  %v132_v15 = vrot.slane %v1856_v3, 7  ;;  %v149_v42 = vrot.slane %v1856_v3, 1 }
   0x3   :  { %v202_v8 = vpack.c.bf16 %v1861_v5, %v1856_v3  ;;  %v15_v10 = vld [vmem:[%s2551_s2] sm:$0xff]  ;;  %v16_v11 = vld [vmem:[%s2551_s2 + $0x8] sm:$0xff]  ;;  %v203_v12 = vpack.c.bf16 %v1871_v7, %v1866_v6  ;;  %v133_v16 = vrot.slane %v1861_v5, 7  ;;  %v1906_v19 = vld [vmem:[%s2552_s0 + $0x38] sm:$0xff]  ;;  %v134_v30 = vrot.slane %v1866_v6, 7 }
   0x4   :  { %1645 = vmatprep.subr.bf16.mxu0 %v22_v4  ;;  %v1890_v13 = vld [vmem:[%s2552_s0 + $0x20] sm:$0xff]  ;;  %v1895_v14 = vld [vmem:[%s2552_s0 + $0x28] sm:$0xff]  ;;  %v21_v17 = vpack.c.bf16 %v16_v11, %v15_v10  ;;  %vm2557_vm1 = vcmp.lt.s32.totalorder %v1876_v9, 1  ;;  %v130_v22 = vld [vmem:[%s2552_s0 + $0x30] sm:$0xff]  ;;  %v139_v23 = vrot.slane %v1906_v19, 7  ;;  %vm2555_vm2 = vcmp.eq.s32.totalorder %v1876_v9, 0 }
   0x5   :  { %1646 = vmatpush3.bf16.msra.mxu0 %v22_v4  ;;  %1647 = vmatprep.mubr.msk.bf16.mxu0 %vm206_vm0, %v202_v8  ;;  %v204_v18 = vpack.c.bf16 %v1895_v14, %v1890_v13  ;;  %v19_v20 = vld [vmem:[%s2551_s2 + $0x20] sm:$0xff]  ;;  %v20_v21 = vld [vmem:[%s2551_s2 + $0x28] sm:$0xff]  ;;  %v147_v24 = vsel %vm2557_vm1, %v132_v15, %v133_v16  ;;  %v136_v25 = vrot.slane %v1890_v13, 7  ;;  %v205_v28 = vpack.c.bf16 %v1906_v19, %v130_v22 }
   0x6   :  { %1655 = vmatprep.subr.bf16.mxu0 %v21_v17  ;;  %v148_v26 = vsel %vm2557_vm1, %v139_v23, %v132_v15  ;;  %v23_v27 = vpack.c.bf16 %v20_v21, %v19_v20  ;;  %v135_v31 = vrot.slane %v1871_v7, 7  ;;  %v137_v33 = vrot.slane %v1895_v14, 7 }
   0x7   :  { %v174_v29 = vsel %vm2555_vm2, 0.0, %v148_v26  ;;  %v146_v36 = vsel %vm2557_vm1, %v133_v16, %v134_v30  ;;  %v138_v40 = vrot.slane %v130_v22, 7  ;;  %v150_v43 = vrot.slane %v1861_v5, 1 }
   0x8   :  { %1648 = vmatmul.mubr.msk.bf16.vlgmr.msra.gmra.mrb[0].mxu0 %vm206_vm0, %v203_v12  ;;  %v198_v32 = vpack.c.bf16 %v147_v24, %v174_v29  ;;  %v144_v34 = vsel %vm2557_vm1, %v135_v31, %v136_v25  ;;  %v145_v35 = vsel %vm2557_vm1, %v134_v30, %v135_v31  ;;  %v143_v37 = vsel %vm2557_vm1, %v136_v25, %v137_v33 }
   0x9   :  { %1656 = vmatpush3.bf16.msra.mxu0 %v21_v17  ;;  %1651 = vmatprep.mubr.msk.bf16.mxu0 %vm206_vm0, %v204_v18  ;;  %v178_v38 = vsel %vm2555_vm2, 0.0, %v144_v34  ;;  %v199_v39 = vpack.c.bf16 %v145_v35, %v146_v36  ;;  %v151_v44 = vrot.slane %v1866_v6, 1  ;;  %vm2558_vm3 = vcmp.lt.s32.totalorder %v1876_v9, 7 }
   0xa   :  { %1665 = vmatprep.subr.bf16.mxu0 %v23_v27  ;;  %v200_v41 = vpack.c.bf16 %v143_v37, %v178_v38  ;;  %v152_v45 = vrot.slane %v1871_v7, 1  ;;  %v141_v46 = vsel %vm2557_vm1, %v138_v40, %v139_v23  ;;  %v142_v47 = vsel %vm2557_vm1, %v137_v33, %v138_v40 }
   0xb   :  { %v1955_v48 = vadd.s32 24, %v1876_v9  ;;  %v153_v49 = vrot.slane %v1890_v13, 1  ;;  %v163_v50 = vsel %vm2558_vm3, %v150_v43, %v151_v44  ;;  %v164_v51 = vsel %vm2558_vm3, %v149_v42, %v150_v43 }
   0xc   :  { %v201_v52 = vpack.c.bf16 %v141_v46, %v142_v47  ;;  %v361_v53 = vpack.c.bf16 %v163_v50, %v164_v51  ;;  %v154_v54 = vrot.slane %v1895_v14, 1  ;;  %v155_v56 = vrot.slane %v130_v22, 1 }
   0xd   :  { %vm2556_vm4 = vcmp.eq.s32.totalorder %v1955_v48, 31  ;;  %v161_v55 = vsel %vm2558_vm3, %v152_v45, %v153_v49  ;;  %v162_v57 = vsel %vm2558_vm3, %v151_v44, %v152_v45  ;;  %v156_v59 = vrot.slane %v1906_v19, 1 }
   0xe   :  { %v193_v58 = vsel %vm2556_vm4, 0.0, %v161_v55  ;;  %v159_v60 = vsel %vm2558_vm3, %v154_v54, %v155_v56  ;;  %v160_v61 = vsel %vm2558_vm3, %v153_v49, %v154_v54 }
   0xf   :  { %v362_v62 = vpack.c.bf16 %v193_v58, %v162_v57  ;;  %v363_v63 = vpack.c.bf16 %v159_v60, %v160_v61  ;;  %v165_v1 = vsel %vm2558_vm3, %v156_v59, %v149_v42  ;;  %v158_v2 = vsel %vm2558_vm3, %v155_v56, %v156_v59 }
  0x10   :  { %1652 = vmatmul.mubr.msk.bf16.gmra.mrb[4].mxu0 %vm206_vm0, %v205_v28  ;;  %v197_v3 = vsel %vm2556_vm4, 0.0, %v165_v1  ;;  %v83_v61 = vand.u32 127, %v69_v0 }
  0x11   :  { %1657 = vmatprep.mubr.msk.bf16.mxu0 %vm206_vm0, %v198_v32  ;;  %v364_v4 = vpack.c.bf16 %v197_v3, %v158_v2 }
  0x12   :  { %vm94_vm6 = vcmp.ge.s32.totalorder %v83_v61, 8  ;;  %vm95_vm7 = vcmp.lt.s32.totalorder %v83_v61, 12  ;;  %vm99_vm8 = vcmp.ge.s32.totalorder %v83_v61, 12  ;;  %vm100_vm9 = vcmp.lt.s32.totalorder %v83_v61, 16 }
  0x13   :  { %vm89_vm11 = vcmp.ge.s32.totalorder %v83_v61, 4  ;;  %vm90_vm12 = vcmp.lt.s32.totalorder %v83_v61, 8  ;;  %vm96_vm13 = vmand %vm94_vm6, %vm95_vm7  ;;  %vm85_vm14 = vcmp.lt.s32.totalorder %v83_v61, 4  ;;  %vm109_vm4 = vcmp.ge.s32.totalorder %v83_v61, 20 }
  0x14   :  { %vm101_vm2 = vmand %vm99_vm8, %vm100_vm9  ;;  %vm110_vm3 = vcmp.lt.s32.totalorder %v83_v61, 24  ;;  %vm104_vm6 = vcmp.ge.s32.totalorder %v83_v61, 16  ;;  %vm105_vm7 = vcmp.lt.s32.totalorder %v83_v61, 20  ;;  %vm524_vm8 = vcmask 257024  }
  0x15   :  { %vm91_vm1 = vmand %vm89_vm11, %vm90_vm12  ;;  %vm119_vm12 = vcmp.ge.s32.totalorder %v83_v61, 28 }
  0x16   :  { %vm111_vm9 = vmand %vm109_vm4, %vm110_vm3 }
  0x17   :  { %vm106_vm11 = vmand %vm104_vm6, %vm105_vm7 }
  0x18   :  { %1658 = vmatmul.mubr.msk.bf16.vlgmr.msra.gmra.mrb[0].mxu0 %vm206_vm0, %v199_v39 }
  0x19   :  { %1666 = vmatpush3.bf16.msra.mxu0 %v23_v27  ;;  %1661 = vmatprep.mubr.msk.bf16.mxu0 %vm206_vm0, %v200_v41 }
  0x20   :  { %1662 = vmatmul.mubr.msk.bf16.gmra.mrb[4].mxu0 %vm206_vm0, %v201_v52 }
  0x21   :  { %1667 = vmatprep.mubr.msk.bf16.mxu0 %vm206_vm0, %v361_v53 }
  0x28   :  { %1668 = vmatmul.mubr.msk.bf16.vlgmr.msra.gmra.mrb[0].mxu0 %vm206_vm0, %v362_v62 }
  0x29   :  { %1671 = vmatprep.mubr.msk.bf16.mxu0 %vm206_vm0, %v363_v63 }
  0x30   :  { %1672 = vmatmul.mubr.msk.bf16.gmra.mrb[4].mxu0 %vm206_vm0, %v364_v4  ;;  %vm521_vm0 = vcmask 1041408  }
  0xfb   :  { %v1986_v5 = vpop.f32.mrb[0].mxu0 }
  0xfc   :  { %v1988_v6 = vpop.f32.mrb[1].mxu0  ;;  %v479_v11 = vmul.f32 %v1986_v5, %v1986_v5  ;;  %v454_v16 = vsel %vm450_vm5, %v1986_v5, 0.0 }
  0xfd   :  { %v477_v7 = vmul.f32 %v1988_v6, %v1988_v6  ;;  %v1992_v8 = vpop.f32.mrb[2].mxu0  ;;  %v451_v12 = vsel %vm450_vm5, %v1988_v6, 0.0 }
  0xfe   :  { %v1994_v10 = vpop.f32.mrb[3].mxu0  ;;  %v480_v18 = vmul.f32 %v1992_v8, %v1992_v8  ;;  %v488_v22 = vsel %vm450_vm5, %v479_v11, 0.0  ;;  %v456_v23 = vsel %vm450_vm5, %v1992_v8, 0.0 }
  0xff   :  { %v452_v13 = vsel %vm450_vm5, %v1994_v10, 0.0  ;;  %v478_v14 = vmul.f32 %v1994_v10, %v1994_v10  ;;  %v485_v17 = vsel %vm450_vm5, %v477_v7, 0.0 }
 0x100   :  { %v453_v15 = vadd.f32 %v452_v13, %v451_v12  ;;  %v490_v28 = vsel %vm450_vm5, %v480_v18, 0.0  ;;  %v1822_v18 = vmov 0.0  }
 0x101   :  { %v486_v19 = vsel %vm450_vm5, %v478_v14, 0.0 }
 0x102   :  { %v455_v20 = vadd.f32 %v454_v16, %v453_v15  ;;  %v487_v21 = vadd.f32 %v486_v19, %v485_v17  ;;  %v2046_v19 = vsel %vm96_vm13, 1.0, %v1822_v18  ;;  %vm120_vm13 = vcmp.lt.s32.totalorder %v83_v61, 32 }
 0x103   :  { %v2013_v24 = vpop.f32.mrb[4].mxu0 }
 0x104   :  { %v457_v25 = vadd.f32 %v456_v23, %v455_v20  ;;  %v489_v26 = vadd.f32 %v488_v22, %v487_v21  ;;  %v2015_v27 = vpop.f32.mrb[5].mxu0  ;;  %v483_v34 = vmul.f32 %v2013_v24, %v2013_v24  ;;  %v467_v41 = vsel %vm450_vm5, %v2013_v24, 0.0 }
 0x105   :  { %v481_v29 = vmul.f32 %v2015_v27, %v2015_v27  ;;  %v2020_v30 = vpop.f32.mrb[6].mxu0  ;;  %v464_v35 = vsel %vm450_vm5, %v2015_v27, 0.0  ;;  %v2049_v20 = vsel %vm85_vm14, 1.0, %v1822_v18  ;;  %v2054_v23 = vsel %vm101_vm2, 1.0, %v1822_v18 }
 0x106   :  { %v458_v31 = vrot.slane %v457_v25, 4  ;;  %v491_v32 = vadd.f32 %v490_v28, %v489_v26  ;;  %v2022_v33 = vpop.f32.mrb[7].mxu0  ;;  %v484_v43 = vmul.f32 %v2020_v30, %v2020_v30  ;;  %v501_v49 = vsel %vm450_vm5, %v483_v34, 0.0 }
 0x107   :  { %v465_v36 = vsel %vm450_vm5, %v2022_v33, 0.0  ;;  %v482_v37 = vmul.f32 %v2022_v33, %v2022_v33  ;;  %v498_v42 = vsel %vm450_vm5, %v481_v29, 0.0  ;;  %v469_v50 = vsel %vm450_vm5, %v2020_v30, 0.0 }
 0x108   :  { %v459_v38 = vadd.f32 %v458_v31, %v457_v25  ;;  %v492_v39 = vrot.slane %v491_v32, 4  ;;  %v466_v40 = vadd.f32 %v465_v36, %v464_v35  ;;  %v503_v54 = vsel %vm450_vm5, %v484_v43, 0.0 }
 0x109   :  { %v499_v44 = vsel %vm450_vm5, %v482_v37, 0.0  ;;  %v2057_v25 = vsel %vm91_vm1, 1.0, %v1822_v18  ;;  %vm114_vm14 = vcmp.ge.s32.totalorder %v83_v61, 24  ;;  %v2067_v35 = vsel %vm111_vm9, 1.0, %v1822_v18  ;;  %vm121_vm1 = vmand %vm119_vm12, %vm120_vm13 }
 0x10a   :  { %v493_v45 = vadd.f32 %v492_v39, %v491_v32  ;;  %v468_v46 = vadd.f32 %v467_v41, %v466_v40  ;;  %v500_v47 = vadd.f32 %v499_v44, %v498_v42  ;;  %v460_v51 = vrot.slane %v459_v38, 2 }
 0x10b   :  { %v2070_v36 = vsel %vm106_vm11, 1.0, %v1822_v18  ;;  %v2077_v41 = vsel %vm121_vm1, 1.0, %v1822_v18  ;;  %vm811_vm13 = vcmask 523264   ;;  %vm2561_vm1 = vcmp.lt.s32.totalorder %v1876_v9, 1 }
 0x10c   :  { %v470_v52 = vadd.f32 %v469_v50, %v468_v46  ;;  %v502_v53 = vadd.f32 %v501_v49, %v500_v47  ;;  %v494_v55 = vrot.slane %v493_v45, 2  ;;  %v461_v58 = vadd.f32 %v460_v51, %v459_v38  ;;  %v709_v50 = vld [vmem:[%s2553_s1 + $0x10] sm:$0xff]  ;;  %v710_v51 = vld [vmem:[%s2553_s1 + $0x18] sm:$0xff] }
 0x10e   :  { %v471_v56 = vrot.slane %v470_v52, 4  ;;  %v504_v57 = vadd.f32 %v503_v54, %v502_v53  ;;  %v495_v62 = vadd.f32 %v494_v55, %v493_v45  ;;  %v462_v2 = vrot.slane %v461_v58, 1  ;;  %v711_v53 = vld [vmem:[%s2553_s1 + $0x20] sm:$0xff]  ;;  %v712_v54 = vld [vmem:[%s2553_s1 + $0x28] sm:$0xff] }
 0x10f   :  { %v707_v55 = vld [vmem:[%s2553_s1] sm:$0xff] }
 0x110   :  { %v472_v59 = vadd.f32 %v471_v56, %v470_v52  ;;  %v505_v60 = vrot.slane %v504_v57, 4  ;;  %v496_v7 = vrot.slane %v495_v62, 1  ;;  %v463_v13 = vadd.f32 %v462_v2, %v461_v58  ;;  %v708_v56 = vld [vmem:[%s2553_s1 + $0x8] sm:$0xff]  ;;  %v34_v2 = vld [vmem:[%s2551_s2 + $0x80] sm:$0xff] }
 0x111   :  { %v1799_v52 = vpack.i.bf16 %v710_v51, %v709_v50  ;;  %v1794_v58 = vpack.i.bf16 %v708_v56, %v707_v55 }
 0x112   :  { %v473_v63 = vrot.slane %v472_v59, 2  ;;  %v506_v1 = vadd.f32 %v505_v60, %v504_v57  ;;  %v497_v0 = vadd.f32 %v496_v7, %v495_v62  ;;  %v1804_v57 = vpack.i.bf16 %v712_v54, %v711_v53  ;;  %v714_v60 = vld [vmem:[%s2553_s1 + $0x38] sm:$0xff]  ;;  %v32_v62 = vld [vmem:[%s2551_s2 + $0x70] sm:$0xff] }
 0x113   :  { %v36_v7 = vld [vmem:[%s2551_s2 + $0x90] sm:$0xff] }
 0x114   :  { %v474_v3 = vadd.f32 %v473_v63, %v472_v59  ;;  %v507_v4 = vrot.slane %v506_v1, 2  ;;  %v713_v59 = vld [vmem:[%s2553_s1 + $0x30] sm:$0xff]  ;;  %v33_v63 = vld [vmem:[%s2551_s2 + $0x78] sm:$0xff] }
 0x116   :  { %v475_v11 = vrot.slane %v474_v3, 1  ;;  %v508_v12 = vadd.f32 %v507_v4, %v506_v1  ;;  %v52_v1 = vpack.c.bf16 %v33_v63, %v32_v62 }
 0x118   :  { %v476_v14 = vadd.f32 %v475_v11, %v474_v3  ;;  %v509_v15 = vrot.slane %v508_v12, 1  ;;  %1675 = vmatprep.subr.bf16.mxu1 %v52_v1  ;;  %v35_v3 = vld [vmem:[%s2551_s2 + $0x88] sm:$0xff]  ;;  %v37_v11 = vld [vmem:[%s2551_s2 + $0x98] sm:$0xff] }
 0x119   :  { %1676 = vmatpush3.bf16.msra.mxu1 %v52_v1  ;;  %v53_v4 = vpack.c.bf16 %v35_v3, %v34_v2 }
 0x11a   :  { %v510_v16 = vadd.f32 %v509_v15, %v508_v12  ;;  %v514_v17 = vsel %vm513_vm10, %v476_v14, %v463_v13  ;;  %v54_v12 = vpack.c.bf16 %v37_v11, %v36_v7  ;;  %v38_v13 = vld [vmem:[%s2551_s2 + $0xa0] sm:$0xff]  ;;  %v39_v14 = vld [vmem:[%s2551_s2 + $0xa8] sm:$0xff]  ;;  %v2160_v11 = vsub.s32 0, %v1876_v9 }
 0x11b   :  { %1677 = vmatprep.subr.bf16.mxu1 %v53_v4  ;;  %v55_v15 = vpack.c.bf16 %v39_v14, %v38_v13  ;;  %v673_v14 = vsub.s32 1, %v1876_v9 }
 0x11c   :  { %v519_v21 = vsel %vm2559_vm15, %v510_v16, %v497_v0  ;;  %vm115_vm15 = vcmp.lt.s32.totalorder %v83_v61, 28  ;;  %v1809_v61 = vpack.i.bf16 %v714_v60, %v713_v59  ;;  %v24_v0 = vld [vmem:[%s2551_s2 + $0x30] sm:$0xff]  ;;  %v25_v16 = vld [vmem:[%s2551_s2 + $0x38] sm:$0xff] }
 0x11d   :  { %v522_v22 = vsel %vm521_vm0, %v514_v17, %v519_v21  ;;  %vm116_vm2 = vmand %vm114_vm14, %vm115_vm15  ;;  %1678 = vmatpush3.bf16.msra.mxu1 %v53_v4  ;;  %v2142_v17 = vpack.c.bf16 %v25_v16, %v24_v0  ;;  %v26_v16 = vld [vmem:[%s2551_s2 + $0x40] sm:$0xff]  ;;  %vm2560_vm14 = vcmp.lt.s32.totalorder %v1876_v9, 7 }
 0x11e   :  { %v536_v26 = vmul.f32 %v2046_v19, %v522_v22  ;;  %v523_v28 = vmul.f32 %v2049_v20, %v522_v22  ;;  %v542_v32 = vmul.f32 %v2054_v23, %v522_v22  ;;  %v530_v34 = vmul.f32 %v2057_v25, %v522_v22  ;;  %1679 = vmatprep.subr.bf16.mxu1 %v54_v12 }
 0x11f   :  { %v554_v39 = vmul.f32 %v2067_v35, %v522_v22  ;;  %v548_v40 = vmul.f32 %v2070_v36, %v522_v22  ;;  %v2080_v42 = vsel %vm116_vm2, 1.0, %v1822_v18  ;;  %v566_v45 = vmul.f32 %v2077_v41, %v522_v22  ;;  %vm2562_vm2 = vmmov %vm2560_vm14 }
 0x120   :  { %v537_v29 = vsel %vm524_vm8, %v536_v26, 0.0  ;;  %v525_v31 = vsel %vm524_vm8, %v523_v28, 0.0  ;;  %v543_v37 = vsel %vm524_vm8, %v542_v32, 0.0  ;;  %v531_v38 = vsel %vm524_vm8, %v530_v34, 0.0 }
 0x121   :  { %538 = vadd.xlane.f32.xlu1 %v537_v29  ;;  %526 = vadd.xlane.f32.xlu0 %v525_v31  ;;  %v555_v43 = vsel %vm524_vm8, %v554_v39, 0.0  ;;  %v549_v44 = vsel %vm524_vm8, %v548_v40, 0.0  ;;  %v560_v46 = vmul.f32 %v2080_v42, %v522_v22  ;;  %v567_v47 = vsel %vm524_vm8, %v566_v45, 0.0 }
 0x122   :  { %1680 = vmatpush3.bf16.msra.mxu1 %v54_v12 }
 0x123   :  { %v561_v49 = vsel %vm524_vm8, %v560_v46, 0.0  ;;  %1681 = vmatprep.subr.bf16.mxu1 %v55_v15 }
 0x125   :  { %544 = vadd.xlane.f32.xlu1 %v543_v37  ;;  %532 = vadd.xlane.f32.xlu0 %v531_v38 }
 0x126   :  { %1682 = vmatpush3.bf16.msra.mxu1 %v55_v15 }
 0x127   :  { %1691 = vmatprep.subr.bf16.mxu1 %v2142_v17 }
 0x129   :  { %556 = vadd.xlane.f32.xlu1 %v555_v43  ;;  %550 = vadd.xlane.f32.xlu0 %v549_v44 }
 0x12d   :  { %568 = vadd.xlane.f32.xlu1 %v567_v47  ;;  %562 = vadd.xlane.f32.xlu0 %v561_v49 }
 0x13e   :  { %1800 = vrot.lane.b32.xlu1 %v1799_v52, %s1823_s24 }
 0x142   :  { %1805 = vrot.lane.b32.xlu1 %v1804_v57, %s1823_s24  ;;  %v1824_v57 = vmov 1966171168  }
 0x143   :  { %1795 = vrot.lane.b32.xlu0 %v1794_v58, %s1823_s24  ;;  %v583_v58 = vunpack.c.l.s4 %v1824_v57 }
 0x146   :  { %1810 = vrot.lane.b32.xlu1 %v1809_v61, %s1823_s24  ;;  %v584_v61 = vunpack.c.0.s8 %v583_v58 }
 0x148   :  { %v2154_v1 = vsub.s32 %v584_v61, %v1876_v9 }
 0x1ae   :  { %v539_v21 = vpop.xlane.xlu1 %538  ;;  %v527_v22 = vpop.xlane.xlu0 %526 }
 0x1af   :  { %v528_v29 = vmul.f32 %v2049_v20, %v527_v22  ;;  %v540_v32 = vmul.f32 %v2046_v19, %v539_v21 }
 0x1b2   :  { %v545_v26 = vpop.xlane.xlu1 %544  ;;  %v533_v28 = vpop.xlane.xlu0 %532 }
 0x1b3   :  { %v534_v31 = vmul.f32 %v2057_v25, %v533_v28  ;;  %v546_v39 = vmul.f32 %v2054_v23, %v545_v26  ;;  %v27_v26 = vld [vmem:[%s2551_s2 + $0x48] sm:$0xff]  ;;  %v28_v28 = vld [vmem:[%s2551_s2 + $0x50] sm:$0xff] }
 0x1b5   :  { %v535_v34 = vadd.f32 %v534_v31, %v528_v29  ;;  %v29_v29 = vld [vmem:[%s2551_s2 + $0x58] sm:$0xff] }
 0x1b6   :  { %v557_v37 = vpop.xlane.xlu1 %556  ;;  %v551_v38 = vpop.xlane.xlu0 %550 }
 0x1b7   :  { %v541_v40 = vadd.f32 %v540_v32, %v535_v34  ;;  %v552_v44 = vmul.f32 %v2070_v36, %v551_v38  ;;  %v558_v46 = vmul.f32 %v2067_v35, %v557_v37  ;;  %v2185_v32 = vld [vmem:[%s2551_s2 + $0x130] sm:$0xf] }
 0x1b9   :  { %v547_v43 = vadd.f32 %v546_v39, %v541_v40  ;;  %v674_v39 = vrot.slane %v2185_v32, %v673_v14 }
 0x1ba   :  { %v563_v45 = vpop.xlane.xlu0 %562  ;;  %v569_v49 = vpop.xlane.xlu1 %568 }
 0x1bb   :  { %v553_v47 = vadd.f32 %v552_v44, %v547_v43  ;;  %v564_v51 = vmul.f32 %v2080_v42, %v563_v45  ;;  %v570_v52 = vmul.f32 %v2077_v41, %v569_v49  ;;  %v2193_v44 = vpack.c.bf16 %v27_v26, %v26_v16 }
 0x1bc   :  { %v2195_v45 = vpack.c.bf16 %v29_v29, %v28_v28 }
 0x1bd   :  { %v559_v50 = vadd.f32 %v558_v46, %v553_v47 }
 0x1be   :  { %v2157_v3 = vpop.permute.xlu1 %1800  ;;  %v2187_v34 = vpop.permute.xlu0 %1795 }
 0x1bf   :  { %v565_v53 = vadd.f32 %v564_v51, %v559_v50  ;;  %v1803_v43 = vunpack.i.h.bf16 %v2157_v3  ;;  %v1802_v47 = vunpack.i.l.bf16 %v2157_v3  ;;  %v1798_v50 = vunpack.i.h.bf16 %v2187_v34 }
 0x1c1   :  { %v571_v54 = vadd.f32 %v570_v52, %v565_v53 }
 0x1c2   :  { %v2165_v15 = vpop.permute.xlu1 %1805 }
 0x1c3   :  { %v572_v55 = vmul.f32 0.0078125, %v571_v54  ;;  %v1808_v53 = vunpack.i.h.bf16 %v2165_v15  ;;  %v1807_v54 = vunpack.i.l.bf16 %v2165_v15 }
 0x1c5   :  { %v573_v56 = vmul.f32 %v572_v55, %v572_v55  ;;  %v588_v2 = vrot.slane %v572_v55, %v2154_v1 }
 0x1c6   :  { %v2200_v51 = vpop.permute.xlu1 %1810 }
 0x1c7   :  { %v575_v59 = vrot.slane %v573_v56, 6  ;;  %v589_v4 = vcombine.high %v588_v2, %v588_v2  ;;  %v596_v12 = vrot.slane %v588_v2, %v2154_v1 }
 0x1c9   :  { %v577_v60 = vsub.f32 %v572_v55, %v575_v59  ;;  %v603_v0 = vrot.slane %v589_v4, %v2154_v1  ;;  %v607_v31 = vrot.slane %v596_v12, %v2160_v11  ;;  %v1797_v55 = vunpack.i.l.bf16 %v2187_v34 }
 0x1cb   :  { %v578_v62 = vmax.f32 %v577_v60, 0.0  ;;  %v611_v40 = vrot.slane %v603_v0, %v2160_v11  ;;  %v616_v52 = vsub.f32 %v1986_v5, %v607_v31  ;;  %v617_v56 = vsub.f32 %v1992_v8, %v607_v31 }
 0x1cc   :  { %v614_v59 = vsub.f32 %v1988_v6, %v607_v31  ;;  %v1813_v5 = vunpack.i.h.bf16 %v2200_v51  ;;  %v1812_v8 = vunpack.i.l.bf16 %v2200_v51 }
 0x1cd   :  { %v579_v63 = vadd.f32 1e-05, %v578_v62  ;;  %v618_v60 = vsub.f32 %v2015_v27, %v611_v40  ;;  %v619_v61 = vsub.f32 %v2022_v33, %v611_v40  ;;  %v615_v62 = vsub.f32 %v1994_v10, %v607_v31 }
 0x1ce   :  { %v621_v12 = vsub.f32 %v2020_v30, %v611_v40 }
 0x1cf   :  { %1814 = vrsqrt.f32 %v579_v63 }
 0x1d9   :  { %v1815_v7 = vpop.eup %1814 }
 0x1da   :  { %v629_v13 = vrot.slane %v1815_v7, %v2154_v1  ;;  %v620_v7 = vsub.f32 %v2013_v24, %v611_v40 }
 0x1dc   :  { %v630_v21 = vcombine.high %v629_v13, %v629_v13  ;;  %v637_v22 = vrot.slane %v629_v13, %v2154_v1 }
 0x1de   :  { %v644_v37 = vrot.slane %v630_v21, %v2154_v1  ;;  %v645_v38 = vcombine.high %v637_v22, %v637_v22 }
 0x1e0   :  { %v646_v46 = vcombine.high %v644_v37, %v644_v37  ;;  %v649_v49 = vmul.f32 %v645_v38, %v2185_v32 }
 0x1e2   :  { %v656_v57 = vrot.slane %v649_v49, %v2160_v11  ;;  %v650_v58 = vmul.f32 %v646_v46, %v2185_v32 }
 0x1e4   :  { %v665_v63 = vmul.f32 %v656_v57, %v616_v52  ;;  %v666_v2 = vmul.f32 %v656_v57, %v617_v56  ;;  %v660_v3 = vrot.slane %v650_v58, %v2160_v11  ;;  %v663_v4 = vmul.f32 %v656_v57, %v614_v59 }
 0x1e5   :  { %v664_v6 = vmul.f32 %v656_v57, %v615_v62 }
 0x1e6   :  { %v677_v13 = vadd.f32 %v674_v39, %v665_v63  ;;  %v678_v27 = vadd.f32 %v674_v39, %v666_v2  ;;  %v667_v14 = vmul.f32 %v660_v3, %v618_v60  ;;  %v668_v33 = vmul.f32 %v660_v3, %v619_v61 }
 0x1e7   :  { %v669_v15 = vmul.f32 %v660_v3, %v620_v7  ;;  %v670_v0 = vmul.f32 %v660_v3, %v621_v12  ;;  %v675_v16 = vadd.f32 %v674_v39, %v663_v4  ;;  %v676_v10 = vadd.f32 %v674_v39, %v664_v6 }
 0x1e8   :  { %vm685_vm3 = vcmp.gt.f32.partialorder %v677_v13, 0.0  ;;  %vm686_vm4 = vcmp.gt.f32.partialorder %v678_v27, 0.0  ;;  %v693_v21 = vmul.f32 0.2, %v677_v13  ;;  %v694_v22 = vmul.f32 0.2, %v678_v27 }
 0x1e9   :  { %v679_v26 = vadd.f32 %v674_v39, %v667_v14  ;;  %v680_v28 = vadd.f32 %v674_v39, %v668_v33  ;;  %v681_v29 = vadd.f32 %v674_v39, %v669_v15  ;;  %v682_v31 = vadd.f32 %v674_v39, %v670_v0 }
 0x1ea   :  { %v701_v24 = vsel %vm685_vm3, %v677_v13, %v693_v21  ;;  %v702_v37 = vsel %vm686_vm4, %v678_v27, %v694_v22  ;;  %vm683_vm15 = vcmp.gt.f32.partialorder %v675_v16, 0.0  ;;  %vm684_vm6 = vcmp.gt.f32.partialorder %v676_v10, 0.0  ;;  %vm2564_vm4 = vmmov %vm2561_vm1 }
 0x1eb   :  { %v2219_v30 = vsel %vm450_vm5, %v701_v24, %v1802_v47  ;;  %v750_v38 = vsel %vm450_vm5, %v702_v37, %v1803_v43  ;;  %vm687_vm7 = vcmp.gt.f32.partialorder %v679_v26, 0.0  ;;  %vm688_vm9 = vcmp.gt.f32.partialorder %v680_v28, 0.0 }
 0x1ec   :  { %v757_v40 = vrot.slane %v2219_v30, 7  ;;  %v758_v46 = vrot.slane %v750_v38, 7  ;;  %v773_v49 = vrot.slane %v2219_v30, 1  ;;  %v774_v51 = vrot.slane %v750_v38, 1 }
 0x1ed   :  { %v695_v52 = vmul.f32 0.2, %v679_v26  ;;  %v696_v56 = vmul.f32 0.2, %v680_v28  ;;  %vm689_vm11 = vcmp.gt.f32.partialorder %v681_v29, 0.0  ;;  %vm690_vm12 = vcmp.gt.f32.partialorder %v682_v31, 0.0 }
 0x1ee   :  { %v2226_v39 = vsel %vm2560_vm14, %v773_v49, %v774_v51  ;;  %v697_v47 = vmul.f32 0.2, %v681_v29  ;;  %v698_v57 = vmul.f32 0.2, %v682_v31  ;;  %v691_v43 = vmul.f32 0.2, %v675_v16  ;;  %vm2571_vm14 = vmmov %vm2561_vm1 }
 0x1ef   :  { %v703_v58 = vsel %vm687_vm7, %v679_v26, %v695_v52  ;;  %v704_v59 = vsel %vm688_vm9, %v680_v28, %v696_v56  ;;  %v692_v60 = vmul.f32 0.2, %v676_v10  ;;  %v2230_v61 = vsel %vm2561_vm1, %v757_v40, %v758_v46  ;;  %vm2568_vm9 = vmmov %vm2561_vm1 }
 0x1f0   :  { %v751_v62 = vsel %vm450_vm5, %v703_v58, %v1807_v54  ;;  %v752_v63 = vsel %vm450_vm5, %v704_v59, %v1808_v53  ;;  %v705_v2 = vsel %vm689_vm11, %v681_v29, %v697_v47  ;;  %v706_v3 = vsel %vm690_vm12, %v682_v31, %v698_v57  ;;  %vm2569_vm11 = vmmov %vm2561_vm1 }
 0x1f1   :  { %v759_v4 = vrot.slane %v751_v62, 7  ;;  %v760_v7 = vrot.slane %v752_v63, 7  ;;  %v775_v12 = vrot.slane %v751_v62, 1  ;;  %v776_v6 = vrot.slane %v752_v63, 1 }
 0x1f2   :  { %v753_v13 = vsel %vm450_vm5, %v705_v2, %v1812_v8  ;;  %v754_v27 = vsel %vm450_vm5, %v706_v3, %v1813_v5  ;;  %v699_v14 = vsel %vm683_vm15, %v675_v16, %v691_v43  ;;  %v700_v33 = vsel %vm684_vm6, %v676_v10, %v692_v60  ;;  %vm2565_vm15 = vmmov %vm2561_vm1 }
 0x1f3   :  { %v782_v15 = vsel %vm2562_vm2, %v774_v51, %v775_v12  ;;  %v761_v54 = vrot.slane %v753_v13, 7  ;;  %v762_v0 = vrot.slane %v754_v27, 7  ;;  %v777_v53 = vrot.slane %v753_v13, 1  ;;  %vm2566_vm6 = vmmov %vm2561_vm1 }
 0x1f4   :  { %vm2563_vm3 = vcmp.eq.s32.totalorder %v1955_v48, 31  ;;  %v778_v22 = vrot.slane %v754_v27, 1  ;;  %v747_v8 = vsel %vm450_vm5, %v699_v14, %v1797_v55  ;;  %v748_v5 = vsel %vm450_vm5, %v700_v33, %v1798_v50  ;;  %v43_v14 = vld [vmem:[%s2551_s2 + $0xc8] sm:$0xff] }
 0x1f5   :  { %v2242_v21 = vsel %vm2563_vm3, 0.0, %v782_v15  ;;  %v755_v10 = vrot.slane %v747_v8, 7  ;;  %v756_v26 = vrot.slane %v748_v5, 7  ;;  %v771_v28 = vrot.slane %v747_v8, 1  ;;  %vm2572_vm3 = vmmov %vm2562_vm2  ;;  %v44_v15 = vld [vmem:[%s2551_s2 + $0xd0] sm:$0xff] }
 0x1f6   :  { %v967_v16 = vpack.c.bf16 %v2242_v21, %v2226_v39  ;;  %v772_v29 = vrot.slane %v748_v5, 1  ;;  %v807_v31 = vpack.c.bf16 %v748_v5, %v747_v8  ;;  %v808_v24 = vpack.c.bf16 %v750_v38, %v2219_v30 }
 0x1f7   :  { %v809_v37 = vpack.c.bf16 %v752_v63, %v751_v62  ;;  %v768_v51 = vsel %vm2564_vm4, %v756_v26, %v757_v40  ;;  %v810_v52 = vpack.c.bf16 %v754_v27, %v753_v13  ;;  %v769_v34 = vsel %vm2565_vm15, %v755_v10, %v756_v26  ;;  %vm2573_vm4 = vmmov %vm2562_vm2  ;;  %v40_v13 = vld [vmem:[%s2551_s2 + $0xb0] sm:$0xff]  ;;  %v41_v27 = vld [vmem:[%s2551_s2 + $0xb8] sm:$0xff] }
 0x1f8   :  { %v770_v50 = vsel %vm2566_vm6, %v762_v0, %v755_v10  ;;  %v804_v55 = vpack.c.bf16 %v2230_v61, %v768_v51  ;;  %1683 = vmatprep.mubr.msk.bf16.mxu1 %vm811_vm13, %v807_v31  ;;  %vm2567_vm7 = vcmp.eq.s32.totalorder %v1876_v9, 0  ;;  %v765_v30 = vsel %vm2568_vm9, %v759_v4, %v760_v7  ;;  %vm2574_vm15 = vmmov %vm2562_vm2 }
 0x1f9   :  { %v787_v56 = vsel %vm2567_vm7, 0.0, %v770_v50  ;;  %v766_v38 = vsel %vm2569_vm11, %v758_v46, %v759_v4  ;;  %1684 = vmatmul.mubr.msk.bf16.vlgmr.msra.gmra.mrb[0].mxu1 %vm811_vm13, %v808_v24  ;;  %vm2570_vm12 = vmmov %vm2567_vm7  ;;  %v763_v57 = vsel %vm2571_vm14, %v761_v54, %v762_v0  ;;  %v764_v43 = vsel %vm2561_vm1, %v760_v7, %v761_v54  ;;  %v46_v0 = vld [vmem:[%s2551_s2 + $0xe0] sm:$0xff] }
 0x1fa   :  { %v803_v40 = vpack.c.bf16 %v769_v34, %v787_v56  ;;  %v791_v47 = vsel %vm2570_vm12, 0.0, %v766_v38  ;;  %1687 = vmatprep.mubr.msk.bf16.mxu1 %vm811_vm13, %v809_v37  ;;  %1692 = vmatpush3.bf16.msra.mxu1 %v2142_v17  ;;  %v806_v59 = vpack.c.bf16 %v763_v57, %v764_v43  ;;  %v784_v46 = vsel %vm2562_vm2, %v772_v29, %v773_v49  ;;  %vm2575_vm6 = vmmov %vm2562_vm2  ;;  %v30_v17 = vld [vmem:[%s2551_s2 + $0x60] sm:$0xff]  ;;  %v31_v49 = vld [vmem:[%s2551_s2 + $0x68] sm:$0xff] }
 0x1fb   :  { %v805_v58 = vpack.c.bf16 %v765_v30, %v791_v47  ;;  %1693 = vmatprep.subr.bf16.mxu1 %v2193_v44  ;;  %v785_v60 = vsel %vm2572_vm3, %v771_v28, %v772_v29  ;;  %v780_v61 = vsel %vm2573_vm4, %v776_v6, %v777_v53  ;;  %v781_v62 = vsel %vm2574_vm15, %v775_v12, %v776_v6  ;;  %vm2576_vm7 = vmmov %vm2562_vm2 }
 0x1fc   :  { %v779_v63 = vsel %vm2575_vm6, %v777_v53, %v778_v22  ;;  %v966_v2 = vpack.c.bf16 %v784_v46, %v785_v60  ;;  %v968_v3 = vpack.c.bf16 %v780_v61, %v781_v62  ;;  %v786_v4 = vsel %vm2576_vm7, %v778_v22, %v771_v28  ;;  %v47_v53 = vld [vmem:[%s2551_s2 + $0xe8] sm:$0xff] }
 0x1fd   :  { %vm2577_vm9 = vcmp.eq.s32.totalorder %v1955_v48, 31  ;;  %v51_v6 = vpack.c.bf16 %v31_v49, %v30_v17  ;;  %v56_v48 = vpack.c.bf16 %v41_v27, %v40_v13  ;;  %v59_v22 = vpack.c.bf16 %v47_v53, %v46_v0 }
 0x1fe   :  { %v802_v7 = vsel %vm2577_vm9, 0.0, %v786_v4  ;;  %1694 = vmatpush3.bf16.msra.mxu1 %v2193_v44  ;;  %v42_v44 = vld [vmem:[%s2551_s2 + $0xc0] sm:$0xff] }
 0x1ff   :  { %v969_v12 = vpack.c.bf16 %v802_v7, %v779_v63  ;;  %1695 = vmatprep.subr.bf16.mxu1 %v2195_v45  ;;  %v57_v33 = vpack.c.bf16 %v43_v14, %v42_v44 }
 0x201   :  { %1688 = vmatmul.mubr.msk.bf16.gmra.mrb[4].mxu1 %vm811_vm13, %v810_v52 }
 0x202   :  { %1696 = vmatpush3.bf16.msra.mxu1 %v2195_v45  ;;  %1699 = vmatprep.mubr.msk.bf16.mxu1 %vm811_vm13, %v803_v40  ;;  %v45_v45 = vld [vmem:[%s2551_s2 + $0xd8] sm:$0xff] }
 0x203   :  { %1697 = vmatprep.subr.bf16.mxu1 %v51_v6  ;;  %v58_v54 = vpack.c.bf16 %v45_v45, %v44_v15 }
 0x206   :  { %1698 = vmatpush3.bf16.msra.mxu1 %v51_v6 }
 0x207   :  { %1707 = vmatprep.subr.bf16.mxu1 %v56_v48 }
 0x209   :  { %1700 = vmatmul.mubr.msk.bf16.vlgmr.msra.gmra.mrb[0].mxu1 %vm811_vm13, %v804_v55 }
 0x20a   :  { %1703 = vmatprep.mubr.msk.bf16.mxu1 %vm811_vm13, %v805_v58  ;;  %1708 = vmatpush3.bf16.msra.mxu1 %v56_v48 }
 0x20b   :  { %1709 = vmatprep.subr.bf16.mxu1 %v57_v33 }
 0x20e   :  { %1710 = vmatpush3.bf16.msra.mxu1 %v57_v33 }
 0x20f   :  { %1711 = vmatprep.subr.bf16.mxu1 %v58_v54 }
 0x211   :  { %1704 = vmatmul.mubr.msk.bf16.gmra.mrb[4].mxu1 %vm811_vm13, %v806_v59 }
 0x212   :  { %1712 = vmatpush3.bf16.msra.mxu1 %v58_v54  ;;  %1715 = vmatprep.mubr.msk.bf16.mxu1 %vm811_vm13, %v966_v2 }
 0x213   :  { %1713 = vmatprep.subr.bf16.mxu1 %v59_v22 }
 0x216   :  { %1714 = vmatpush3.bf16.msra.mxu1 %v59_v22 }
 0x219   :  { %1716 = vmatmul.mubr.msk.bf16.vlgmr.msra.gmra.mrb[0].mxu1 %vm811_vm13, %v967_v16 }
 0x21a   :  { %1719 = vmatprep.mubr.msk.bf16.mxu1 %vm811_vm13, %v968_v3 }
 0x221   :  { %1720 = vmatmul.mubr.msk.bf16.gmra.mrb[4].mxu1 %vm811_vm13, %v969_v12  ;;  %vm2578_vm13 = vcmask 1043459  }
 0x2ec   :  { %v2336_v8 = vpop.f32.mrb[0].mxu1 }
 0x2ed   :  { %v2338_v5 = vpop.f32.mrb[1].mxu1  ;;  %v1083_v39 = vmul.f32 %v2336_v8, %v2336_v8  ;;  %v1058_v24 = vsel %vm450_vm5, %v2336_v8, 0.0 }
 0x2ee   :  { %v1081_v10 = vmul.f32 %v2338_v5, %v2338_v5  ;;  %v2342_v26 = vpop.f32.mrb[2].mxu1  ;;  %v1055_v21 = vsel %vm450_vm5, %v2338_v5, 0.0 }
 0x2ef   :  { %v2344_v28 = vpop.f32.mrb[3].mxu1  ;;  %v1084_v51 = vmul.f32 %v2342_v26, %v2342_v26  ;;  %v1092_v55 = vsel %vm450_vm5, %v1083_v39, 0.0  ;;  %v1060_v56 = vsel %vm450_vm5, %v2342_v26, 0.0 }
 0x2f0   :  { %v1056_v16 = vsel %vm450_vm5, %v2344_v28, 0.0  ;;  %v1082_v29 = vmul.f32 %v2344_v28, %v2344_v28  ;;  %v1089_v37 = vsel %vm450_vm5, %v1081_v10, 0.0 }
 0x2f1   :  { %v1057_v31 = vadd.f32 %v1056_v16, %v1055_v21  ;;  %v1094_v57 = vsel %vm450_vm5, %v1084_v51, 0.0 }
 0x2f2   :  { %v1090_v52 = vsel %vm450_vm5, %v1082_v29, 0.0 }
 0x2f3   :  { %v1059_v34 = vadd.f32 %v1058_v24, %v1057_v31  ;;  %v1091_v50 = vadd.f32 %v1090_v52, %v1089_v37 }
 0x2f4   :  { %v2363_v30 = vpop.f32.mrb[4].mxu1 }
 0x2f5   :  { %v1061_v38 = vadd.f32 %v1060_v56, %v1059_v34  ;;  %v1093_v40 = vadd.f32 %v1092_v55, %v1091_v50  ;;  %v2365_v47 = vpop.f32.mrb[5].mxu1  ;;  %v1087_v61 = vmul.f32 %v2363_v30, %v2363_v30  ;;  %v1071_v4 = vsel %vm450_vm5, %v2363_v30, 0.0 }
 0x2f6   :  { %v1085_v43 = vmul.f32 %v2365_v47, %v2365_v47  ;;  %v2370_v58 = vpop.f32.mrb[6].mxu1  ;;  %v1068_v62 = vsel %vm450_vm5, %v2365_v47, 0.0 }
 0x2f7   :  { %v1062_v59 = vrot.slane %v1061_v38, 4  ;;  %v1095_v46 = vadd.f32 %v1094_v57, %v1093_v40  ;;  %v2372_v60 = vpop.f32.mrb[7].mxu1  ;;  %v1088_v12 = vmul.f32 %v2370_v58, %v2370_v58  ;;  %v1105_v44 = vsel %vm450_vm5, %v1087_v61, 0.0 }
 0x2f8   :  { %v1069_v63 = vsel %vm450_vm5, %v2372_v60, 0.0  ;;  %v1086_v17 = vmul.f32 %v2372_v60, %v2372_v60  ;;  %v1102_v7 = vsel %vm450_vm5, %v1085_v43, 0.0  ;;  %v1073_v14 = vsel %vm450_vm5, %v2370_v58, 0.0 }
 0x2f9   :  { %v1063_v49 = vadd.f32 %v1062_v59, %v1061_v38  ;;  %v1096_v2 = vrot.slane %v1095_v46, 4  ;;  %v1070_v3 = vadd.f32 %v1069_v63, %v1068_v62  ;;  %v1107_v54 = vsel %vm450_vm5, %v1088_v12, 0.0 }
 0x2fa   :  { %v1103_v6 = vsel %vm450_vm5, %v1086_v17, 0.0 }
 0x2fb   :  { %v1097_v13 = vadd.f32 %v1096_v2, %v1095_v46  ;;  %v1072_v27 = vadd.f32 %v1071_v4, %v1070_v3  ;;  %v1104_v48 = vadd.f32 %v1103_v6, %v1102_v7  ;;  %v1064_v33 = vrot.slane %v1063_v49, 2 }
 0x2fd   :  { %v1074_v15 = vadd.f32 %v1073_v14, %v1072_v27  ;;  %v1106_v45 = vadd.f32 %v1105_v44, %v1104_v48  ;;  %v1098_v0 = vrot.slane %v1097_v13, 2  ;;  %v1065_v10 = vadd.f32 %v1064_v33, %v1063_v49  ;;  %v60_v33 = vld [vmem:[%s2551_s2 + $0xf0] sm:$0xff] }
 0x2ff   :  { %v1075_v53 = vrot.slane %v1074_v15, 4  ;;  %v1108_v22 = vadd.f32 %v1107_v54, %v1106_v45  ;;  %v1099_v16 = vadd.f32 %v1098_v0, %v1097_v13  ;;  %v1066_v24 = vrot.slane %v1065_v10, 1  ;;  %v62_v45 = vld [vmem:[%s2551_s2 + $0x100] sm:$0xff] }
 0x300   :  { %v1825_v54 = vmov 0.0|0.0  }
 0x301   :  { %v1076_v39 = vadd.f32 %v1075_v53, %v1074_v15  ;;  %v1109_v21 = vrot.slane %v1108_v22, 4  ;;  %v1100_v52 = vrot.slane %v1099_v16, 1  ;;  %v1067_v55 = vadd.f32 %v1066_v24, %v1065_v10  ;;  %v61_v15 = vld [vmem:[%s2551_s2 + $0xf8] sm:$0xff]  ;;  %1745 = vmatprep.subr.bf16.mxu0 %v1825_v54  ;;  %v63_v53 = vld [vmem:[%s2551_s2 + $0x108] sm:$0xff] }
 0x302   :  { %v1746_v0 = vpack.c.bf16 %v61_v15, %v60_v33 }
 0x303   :  { %v1077_v29 = vrot.slane %v1076_v39, 2  ;;  %v1110_v31 = vadd.f32 %v1109_v21, %v1108_v22  ;;  %v1101_v40 = vadd.f32 %v1100_v52, %v1099_v16  ;;  %v1749_v22 = vpack.c.bf16 %v63_v53, %v62_v45 }
 0x304   :  { %1747 = vmatpush3.bf16.msra.mxu0 %v1746_v0 }
 0x305   :  { %v1078_v37 = vadd.f32 %v1077_v29, %v1076_v39  ;;  %v1111_v51 = vrot.slane %v1110_v31, 2  ;;  %1748 = vmatprep.subr.bf16.mxu0 %v1825_v54 }
 0x307   :  { %v1079_v34 = vrot.slane %v1078_v37, 1  ;;  %v1112_v50 = vadd.f32 %v1111_v51, %v1110_v31 }
 0x308   :  { %1750 = vmatpush3.bf16.msra.mxu0 %v1749_v22 }
 0x309   :  { %v1080_v56 = vadd.f32 %v1079_v34, %v1078_v37  ;;  %v1113_v38 = vrot.slane %v1112_v50, 1  ;;  %1751 = vmatprep.subr.bf16.mxu0 %v1825_v54 }
 0x30b   :  { %v1114_v57 = vadd.f32 %v1113_v38, %v1112_v50  ;;  %v1117_v43 = vsel %vm513_vm10, %v1080_v56, %v1067_v55 }
 0x30d   :  { %v1121_v59 = vsel %vm2578_vm13, %v1114_v57, %v1101_v40 }
 0x30e   :  { %v1123_v46 = vsel %vm521_vm0, %v1117_v43, %v1121_v59  ;;  %vm1826_vm0 = vmmov 0  }
 0x30f   :  { %v1130_v61 = vmul.f32 %v2057_v25, %v1123_v46  ;;  %v1124_v62 = vmul.f32 %v2049_v20, %v1123_v46  ;;  %v1154_v49 = vmul.f32 %v2067_v35, %v1123_v46  ;;  %v1136_v2 = vmul.f32 %v2046_v19, %v1123_v46  ;;  %1731 = vmatprep.mubr.msk.f32.mxu0 %vm1826_vm0, %v1822_v18 }
 0x310   :  { %v1166_v7 = vmul.f32 %v2077_v41, %v1123_v46  ;;  %v1142_v12 = vmul.f32 %v2054_v23, %v1123_v46  ;;  %v1148_v27 = vmul.f32 %v2070_v36, %v1123_v46  ;;  %v1160_v44 = vmul.f32 %v2080_v42, %v1123_v46 }
 0x311   :  { %v1131_v63 = vsel %vm524_vm8, %v1130_v61, 0.0  ;;  %v1125_v17 = vsel %vm524_vm8, %v1124_v62, 0.0  ;;  %v1155_v3 = vsel %vm524_vm8, %v1154_v49, 0.0  ;;  %v1137_v4 = vsel %vm524_vm8, %v1136_v2, 0.0 }
 0x312   :  { %1132 = vadd.xlane.f32.xlu1 %v1131_v63  ;;  %1126 = vadd.xlane.f32.xlu0 %v1125_v17  ;;  %v1167_v6 = vsel %vm524_vm8, %v1166_v7, 0.0  ;;  %v1143_v13 = vsel %vm524_vm8, %v1142_v12, 0.0  ;;  %v1149_v48 = vsel %vm524_vm8, %v1148_v27, 0.0  ;;  %v1161_v14 = vsel %vm524_vm8, %v1160_v44, 0.0 }
 0x313   :  { %v1290_v27 = vsub.s32 3, %v1876_v9 }
 0x315   :  { %v1291_v0 = vrot.slane %v2185_v32, %v1290_v27 }
 0x316   :  { %1156 = vadd.xlane.f32.xlu1 %v1155_v3  ;;  %1138 = vadd.xlane.f32.xlu0 %v1137_v4 }
 0x31a   :  { %1168 = vadd.xlane.f32.xlu1 %v1167_v6  ;;  %1144 = vadd.xlane.f32.xlu0 %v1143_v13 }
 0x31e   :  { %1150 = vadd.xlane.f32.xlu0 %v1149_v48 }
 0x322   :  { %1162 = vadd.xlane.f32.xlu0 %v1161_v14 }
 0x39f   :  { %v1127_v10 = vpop.xlane.xlu0 %1126  ;;  %v1133_v39 = vpop.xlane.xlu1 %1132 }
 0x3a0   :  { %v1134_v16 = vmul.f32 %v2057_v25, %v1133_v39  ;;  %v1128_v29 = vmul.f32 %v2049_v20, %v1127_v10 }
 0x3a2   :  { %v1135_v37 = vadd.f32 %v1134_v16, %v1128_v29 }
 0x3a3   :  { %v1139_v21 = vpop.xlane.xlu0 %1138  ;;  %v1157_v52 = vpop.xlane.xlu1 %1156 }
 0x3a4   :  { %v1140_v31 = vmul.f32 %v2046_v19, %v1139_v21  ;;  %v1158_v38 = vmul.f32 %v2067_v35, %v1157_v52  ;;  %v1256_v35 = vrot.slane %v2185_v32, %v2154_v1 }
 0x3a6   :  { %v1141_v34 = vadd.f32 %v1140_v31, %v1135_v37  ;;  %v1263_v3 = vrot.slane %v1256_v35, %v2154_v1 }
 0x3a7   :  { %v1145_v24 = vpop.xlane.xlu0 %1144  ;;  %v1169_v57 = vpop.xlane.xlu1 %1168 }
 0x3a8   :  { %v1146_v51 = vmul.f32 %v2054_v23, %v1145_v24  ;;  %v1170_v19 = vmul.f32 %v2077_v41, %v1169_v57  ;;  %v1264_v12 = vcombine.high %v1263_v3, %v1263_v3 }
 0x3aa   :  { %v1147_v55 = vadd.f32 %v1146_v51, %v1141_v34 }
 0x3ab   :  { %v1151_v50 = vpop.xlane.xlu0 %1150 }
 0x3ac   :  { %v1152_v56 = vmul.f32 %v2070_v36, %v1151_v50 }
 0x3ae   :  { %v1153_v40 = vadd.f32 %v1152_v56, %v1147_v55 }
 0x3af   :  { %v1163_v43 = vpop.xlane.xlu0 %1162 }
 0x3b0   :  { %v1159_v25 = vadd.f32 %v1158_v38, %v1153_v40  ;;  %v1164_v20 = vmul.f32 %v2080_v42, %v1163_v43 }
 0x3b2   :  { %v1165_v59 = vadd.f32 %v1164_v20, %v1159_v25 }
 0x3b4   :  { %v1171_v46 = vadd.f32 %v1170_v19, %v1165_v59 }
 0x3b6   :  { %v1172_v61 = vmul.f32 0.0078125, %v1171_v46 }
 0x3b8   :  { %v1173_v23 = vmul.f32 %v1172_v61, %v1172_v61  ;;  %v1188_v36 = vrot.slane %v1172_v61, %v2154_v1 }
 0x3ba   :  { %v1175_v62 = vrot.slane %v1173_v23, 6  ;;  %v1189_v2 = vcombine.high %v1188_v36, %v1188_v36  ;;  %v1196_v41 = vrot.slane %v1188_v36, %v2154_v1 }
 0x3bc   :  { %v1177_v63 = vsub.f32 %v1172_v61, %v1175_v62  ;;  %v1203_v7 = vrot.slane %v1189_v2, %v2154_v1  ;;  %v1207_v48 = vrot.slane %v1196_v41, %v2160_v11 }
 0x3be   :  { %v1178_v17 = vmax.f32 %v1177_v63, 0.0  ;;  %v1211_v33 = vrot.slane %v1203_v7, %v2160_v11  ;;  %v1214_v53 = vsub.f32 %v2338_v5, %v1207_v48  ;;  %v1215_v22 = vsub.f32 %v2344_v28, %v1207_v48 }
 0x3bf   :  { %v1216_v10 = vsub.f32 %v2336_v8, %v1207_v48  ;;  %v1217_v39 = vsub.f32 %v2342_v26, %v1207_v48 }
 0x3c0   :  { %v1179_v49 = vadd.f32 1e-05, %v1178_v17  ;;  %v1218_v16 = vsub.f32 %v2365_v47, %v1211_v33  ;;  %v1219_v29 = vsub.f32 %v2372_v60, %v1211_v33  ;;  %v1220_v31 = vsub.f32 %v2363_v30, %v1211_v33 }
 0x3c1   :  { %v1221_v24 = vsub.f32 %v2370_v58, %v1211_v33 }
 0x3c2   :  { %1816 = vrsqrt.f32 %v1179_v49 }
 0x3cc   :  { %v1817_v42 = vpop.eup %1816 }
 0x3cd   :  { %v1229_v4 = vrot.slane %v1817_v42, %v2154_v1 }
 0x3cf   :  { %v1230_v6 = vcombine.high %v1229_v4, %v1229_v4  ;;  %v1237_v13 = vrot.slane %v1229_v4, %v2154_v1 }
 0x3d1   :  { %v1244_v44 = vrot.slane %v1230_v6, %v2154_v1  ;;  %v1245_v14 = vcombine.high %v1237_v13, %v1237_v13 }
 0x3d3   :  { %v1246_v15 = vcombine.high %v1244_v44, %v1244_v44  ;;  %v1266_v45 = vmul.f32 %v1264_v12, %v1245_v14 }
 0x3d5   :  { %v1267_v9 = vmul.f32 %v1264_v12, %v1246_v15  ;;  %v1273_v21 = vrot.slane %v1266_v45, %v2160_v11 }
 0x3d7   :  { %v1277_v32 = vrot.slane %v1267_v9, %v2160_v11  ;;  %v1280_v5 = vmul.f32 %v1273_v21, %v1214_v53  ;;  %v1281_v37 = vmul.f32 %v1273_v21, %v1215_v22  ;;  %v1282_v28 = vmul.f32 %v1273_v21, %v1216_v10 }
 0x3d8   :  { %v1283_v51 = vmul.f32 %v1273_v21, %v1217_v39 }
 0x3d9   :  { %v1284_v8 = vmul.f32 %v1277_v32, %v1218_v16  ;;  %v1285_v52 = vmul.f32 %v1277_v32, %v1219_v29  ;;  %v1286_v26 = vmul.f32 %v1277_v32, %v1220_v31  ;;  %v1287_v34 = vmul.f32 %v1277_v32, %v1221_v24  ;;  %v64_v31 = vld [vmem:[%s2551_s2 + $0x110] sm:$0xff]  ;;  %v65_v24 = vld [vmem:[%s2551_s2 + $0x118] sm:$0xff] }
 0x3da   :  { %v1292_v50 = vadd.f32 %v1291_v0, %v1280_v5  ;;  %v1293_v55 = vadd.f32 %v1291_v0, %v1281_v37  ;;  %v1294_v56 = vadd.f32 %v1291_v0, %v1282_v28  ;;  %v1295_v47 = vadd.f32 %v1291_v0, %v1283_v51 }
 0x3db   :  { %v1296_v38 = vadd.f32 %v1291_v0, %v1284_v8  ;;  %v1297_v60 = vadd.f32 %v1291_v0, %v1285_v52  ;;  %v1298_v40 = vadd.f32 %v1291_v0, %v1286_v26  ;;  %v1299_v30 = vadd.f32 %v1291_v0, %v1287_v34  ;;  %v66_v8 = vld [vmem:[%s2551_s2 + $0x120] sm:$0xff]  ;;  %v67_v52 = vld [vmem:[%s2551_s2 + $0x128] sm:$0xff] }
 0x3dc   :  { %vm1300_vm8 = vcmp.gt.f32.partialorder %v1292_v50, 0.0  ;;  %vm1301_vm11 = vcmp.gt.f32.partialorder %v1293_v55, 0.0  ;;  %vm1302_vm12 = vcmp.gt.f32.partialorder %v1294_v56, 0.0  ;;  %vm1303_vm14 = vcmp.gt.f32.partialorder %v1295_v47, 0.0 }
 0x3dd   :  { %vm1304_vm1 = vcmp.gt.f32.partialorder %v1296_v38, 0.0  ;;  %vm1305_vm2 = vcmp.gt.f32.partialorder %v1297_v60, 0.0  ;;  %v1308_v58 = vmul.f32 0.2, %v1292_v50  ;;  %v1309_v57 = vmul.f32 0.2, %v1293_v55 }
 0x3de   :  { %v1310_v43 = vmul.f32 0.2, %v1294_v56  ;;  %v1311_v25 = vmul.f32 0.2, %v1295_v47  ;;  %v1312_v20 = vmul.f32 0.2, %v1296_v38  ;;  %v1752_v28 = vpack.c.bf16 %v65_v24, %v64_v31 }
 0x3df   :  { %v1313_v19 = vmul.f32 0.2, %v1297_v60  ;;  %vm1306_vm3 = vcmp.gt.f32.partialorder %v1298_v40, 0.0  ;;  %v1314_v59 = vmul.f32 0.2, %v1298_v40  ;;  %v2459_v46 = vsel %vm1300_vm8, %v1292_v50, %v1308_v58 }
 0x3e0   :  { %v2461_v61 = vsel %vm1301_vm11, %v1293_v55, %v1309_v57  ;;  %v1315_v23 = vmul.f32 0.2, %v1299_v30  ;;  %v2463_v62 = vsel %vm1302_vm12, %v1294_v56, %v1310_v43  ;;  %v2465_v63 = vsel %vm1304_vm1, %v1296_v38, %v1312_v20 }
 0x3e1   :  { %v2467_v17 = vsel %vm1305_vm2, %v1297_v60, %v1313_v19  ;;  %vm1307_vm4 = vcmp.gt.f32.partialorder %v1299_v30, 0.0  ;;  %v1324_v49 = vsel %vm450_vm5, %v2459_v46, 0.0  ;;  %v1325_v36 = vsel %vm450_vm5, %v2461_v61, 0.0 }
 0x3e2   :  { %v2474_v35 = vsel %vm1303_vm14, %v1295_v47, %v1311_v25  ;;  %v2476_v2 = vsel %vm1306_vm3, %v1298_v40, %v1314_v59  ;;  %v1326_v3 = vadd.f32 %v1325_v36, %v1324_v49  ;;  %v1337_v42 = vsel %vm450_vm5, %v2465_v63, 0.0 }
 0x3e3   :  { %v1327_v41 = vsel %vm450_vm5, %v2463_v62, 0.0  ;;  %v1338_v4 = vsel %vm450_vm5, %v2467_v17, 0.0  ;;  %v1323_v7 = vsel %vm1307_vm4, %v1299_v30, %v1315_v23  ;;  %v1329_v13 = vsel %vm450_vm5, %v2474_v35, 0.0 }
 0x3e4   :  { %v1328_v12 = vadd.f32 %v1327_v41, %v1326_v3  ;;  %v1339_v6 = vadd.f32 %v1338_v4, %v1337_v42  ;;  %v1340_v27 = vsel %vm450_vm5, %v2476_v2, 0.0  ;;  %v1342_v14 = vsel %vm450_vm5, %v1323_v7, 0.0 }
 0x3e5   :  { %v1755_v26 = vpack.c.bf16 %v67_v52, %v66_v8 }
 0x3e6   :  { %v1330_v48 = vadd.f32 %v1329_v13, %v1328_v12  ;;  %v1341_v44 = vadd.f32 %v1340_v27, %v1339_v6 }
 0x3e8   :  { %v1331_v33 = vrot.slane %v1330_v48, 4  ;;  %v1343_v15 = vadd.f32 %v1342_v14, %v1341_v44 }
 0x3ea   :  { %v1332_v45 = vadd.f32 %v1331_v33, %v1330_v48  ;;  %v1344_v0 = vrot.slane %v1343_v15, 4 }
 0x3ec   :  { %v1333_v53 = vrot.slane %v1332_v45, 2  ;;  %v1345_v22 = vadd.f32 %v1344_v0, %v1343_v15 }
 0x3ee   :  { %v1334_v10 = vadd.f32 %v1333_v53, %v1332_v45  ;;  %v1346_v39 = vrot.slane %v1345_v22, 2 }
 0x3f0   :  { %v1335_v9 = vrot.slane %v1334_v10, 1  ;;  %v1347_v21 = vadd.f32 %v1346_v39, %v1345_v22 }
 0x3f2   :  { %v1336_v16 = vadd.f32 %v1335_v9, %v1334_v10  ;;  %v1348_v29 = vrot.slane %v1347_v21, 1 }
 0x3f4   :  { %v1349_v32 = vadd.f32 %v1348_v29, %v1347_v21  ;;  %v1351_v5 = vmul.f32 0.03125, %v1336_v16 }
 0x3f6   :  { %v1352_v37 = vmul.f32 0.03125, %v1349_v32 }
 0x3f8   :  { %v1355_v51 = vsel %vm513_vm10, %v1352_v37, %v1351_v5 }
 0x3f9   :  { %1732 = vmatmul.mubr.msk.f32.vlgmr.msra.gmra.mrb[8].mxu0 %vm450_vm5, %v1355_v51 }
 0x3fa   :  { %1753 = vmatpush3.bf16.msra.mxu0 %v1752_v28  ;;  %1742 = vmatprep.mubr.msk.f32.mxu0 %vm1826_vm0, %v1822_v18 }
 0x3fb   :  { %1754 = vmatprep.subr.bf16.mxu0 %v1825_v54 }
 0x3fe   :  { %1756 = vmatpush3.bf16.msra.mxu0 %v1755_v26 }
 0x4cc   :  { %v1424_v34 = vpop.f32.mrb[8].mxu0 }
 0x4cd   :  { %v1428_v50 = vmax.f32 %v1424_v34, 0.0  ;;  %v1733_v55 = vpop.f32.mrb[9].mxu0 }
 0x4cf   :  { %1743 = vmatmul.mubr.msk.f32.vlgmr.msra.gmra.mrb[10].mxu0 %vm450_vm5, %v1428_v50 }
 0x5a2   :  { %v1498_v56 = vpop.f32.mrb[10].mxu0 }
 0x5a3   :  { %v1595_v47 = vmul.f32 -1.442695, %v1498_v56  ;;  %v1744_v18 = vpop.f32.mrb[11].mxu0 }
 0x5a5   :  { %1818 = vpow2.f32 %v1595_v47 }
 0x5af   :  { %v1819_v54 = vpop.eup %1818 }
 0x5b0   :  { %v1505_v38 = vadd.f32 1.0, %v1819_v54 }
 0x5b2   :  { %1820 = vrcp.f32 %v1505_v38 }
 0x5bc   :  { %v1821_v60 = vpop.eup %1820 }
 0x5bd   :  { %v1515_v40 = vrot.slane %v1821_v60, %v2154_v1 }
 0x5bf   :  { %v1516_v30 = vcombine.high %v1515_v40, %v1515_v40  ;;  %v1523_v58 = vrot.slane %v1515_v40, %v2154_v1 }
 0x5c1   :  { %v1530_v57 = vrot.slane %v1516_v30, %v2154_v1  ;;  %v1534_v43 = vrot.slane %v1523_v58, %v2160_v11 }
 0x5c3   :  { %v1538_v25 = vrot.slane %v1530_v57, %v2160_v11  ;;  %v1541_v20 = vmul.f32 %v1534_v43, %v2459_v46  ;;  %v1542_v19 = vmul.f32 %v1534_v43, %v2461_v61  ;;  %v1543_v59 = vmul.f32 %v1534_v43, %v2463_v62 }
 0x5c4   :  { %v1544_v23 = vmul.f32 %v1534_v43, %v2474_v35 }
 0x5c5   :  { %v1545_v49 = vmul.f32 %v1538_v25, %v2465_v63  ;;  %v1546_v36 = vmul.f32 %v1538_v25, %v2467_v17  ;;  %v1547_v3 = vmul.f32 %v1538_v25, %v2476_v2  ;;  %v1548_v42 = vmul.f32 %v1538_v25, %v1323_v7  ;;  %1549 = vst.msk [vmem:[%s2554_s3] sm:$0xff] %vm450_vm5, %v1541_v20 }
 0x5c6   :  { %1550 = vst.msk [vmem:[%s2554_s3 + $0x8] sm:$0xff] %vm450_vm5, %v1542_v19  ;;  %1551 = vst.msk [vmem:[%s2554_s3 + $0x10] sm:$0xff] %vm450_vm5, %v1543_v59 }
 0x5c7   :  { %1552 = vst.msk [vmem:[%s2554_s3 + $0x18] sm:$0xff] %vm450_vm5, %v1544_v23  ;;  %1553 = vst.msk [vmem:[%s2554_s3 + $0x20] sm:$0xff] %vm450_vm5, %v1545_v49 }
 0x5c8   :  { %1554 = vst.msk [vmem:[%s2554_s3 + $0x28] sm:$0xff] %vm450_vm5, %v1546_v36  ;;  %1555 = vst.msk [vmem:[%s2554_s3 + $0x30] sm:$0xff] %vm450_vm5, %v1547_v3 }
 0x5c9   :  { %1556 = vst.msk [vmem:[%s2554_s3 + $0x38] sm:$0xff] %vm450_vm5, %v1548_v42 }

</bundles_post_ra>
